<compile_context>
chip_gen: v5e
topology: v5e:2x2
jax: 0.10.0
libtpu: 0.0.40
codegen_flags: <defaults>
</compile_context>

<pallas_src>
import functools
import math

import jax
import jax.numpy as jnp
from jax.experimental import pallas as pl
from jax.experimental.pallas import tpu as pltpu


def _round_up(x, m):
    return (x + m - 1) // m * m


# --------------------------------------------------------------------------- #
# Kernel 1: direct conv + bias + ReLU + BN batch statistics                    #
#   one (sample, depth-slice) per grid step                                    #
# --------------------------------------------------------------------------- #
def _make_conv_kernel(K, Wp, HoWp, KCin, Cp):
    def kernel(x_ref, w_ref, b_ref, m_ref, y_ref, s_ref, q_ref):
        do = pl.program_id(1)
        # K*K dots of contraction K*Cin; accumulate in a local f32 value chain
        # (no per-tap VMEM read-modify-write).
        acc = None
        for kd in range(K):
            for kh in range(K):
                lhs = x_ref[0, pl.ds(do + kd, 1), pl.ds(kh * Wp, HoWp), :]
                lhs = lhs.reshape(HoWp, KCin)                 # free squeeze
                part = jnp.dot(lhs, w_ref[kd, kh],
                               preferred_element_type=jnp.float32)
                acc = part if acc is None else acc + part
        y = jnp.maximum(acc + b_ref[...], 0.0)                # conv bias + ReLU (f32)

        # Per-depth-slice BN partial sums in f32; the 0/1 row mask excludes the
        # (K-1) wrap-around columns of the flattened plane from the statistics.
        ym = y * m_ref[...]
        s_ref[...] = jnp.sum(ym, axis=0, keepdims=True).reshape(1, 1, 1, Cp)
        q_ref[...] = jnp.sum(ym * y, axis=0, keepdims=True).reshape(1, 1, 1, Cp)

        # Single bf16 writeback; wrap columns are left as-is (sliced off at the
        # module boundary), so no extra select pass on the y tile.
        y_ref[...] = y.astype(jnp.bfloat16).reshape(1, 1, HoWp, Cp)

    return kernel


# --------------------------------------------------------------------------- #
# Kernel 2: BatchNorm affine  out = y * scale + shift  (lane-dense tiles)      #
# --------------------------------------------------------------------------- #
def _affine_kernel(y_ref, sc_ref, sh_ref, o_ref):
    o_ref[...] = y_ref[...].astype(jnp.float32) * sc_ref[...] + sh_ref[...]


# --------------------------------------------------------------------------- #
# Module forward                                                               #
# --------------------------------------------------------------------------- #
def conv3x3x3_forward(params, x, *, kernel_size=3, padding=0, eps=1e-5):
    """Forward of the PyTorch Conv3x3x3 module:
         out = BatchNorm3d(relu(Conv3d(x)))   (training-mode batch statistics)
    x: [N, Cin, D, H, W] float32 (NCDHW) -> [N, Cout, Do, Ho, Wo] float32.
    """
    # TODO(synk): stride != 1 is not implemented (module default stride=1).
    w, b = params["w"], params["b"]
    gamma, beta = params["gamma"], params["beta"]
    Cout, Cin, K, _, _ = w.shape
    assert K == kernel_size
    N, _, D, H, W = x.shape

    # ---- boundary-only layout change: NCDHW -> NDHWC, flatten the (H, W) plane
    xt = jnp.transpose(x, (0, 2, 3, 4, 1))
    if padding:
        p = padding
        xt = jnp.pad(xt, ((0, 0), (p, p), (p, p), (p, p), (0, 0)))
    Dp, Hp, Wp = D + 2 * padding, H + 2 * padding, W + 2 * padding
    Do, Ho, Wo = Dp - K + 1, Hp - K + 1, Wp - K + 1
    plane = Hp * Wp
    HoWp = Ho * Wp
    KCin = K * Cin
    Cp = _round_up(Cout, 128)            # lane-dense channel axis (unmasked vst)

    # Fold the kw taps into the channel axis (cheap in HBM since Cin is tiny):
    # x_fold[n, d, p, kw*Cin + c] = x_flat[n, d, p + kw, c]
    x_flat = xt.reshape(N, Dp, plane, Cin).astype(jnp.bfloat16)   # bf16 MXU operand
    x_flat = jnp.pad(x_flat, ((0, 0), (0, 0), (0, K - 1), (0, 0)))
    x_fold = jnp.concatenate(
        [x_flat[:, :, kw:kw + plane, :] for kw in range(K)], axis=-1)

    # Weights folded to match: w_fold[kd, kh, kw*Cin + c, cout]
    wt = jnp.transpose(w, (2, 3, 4, 1, 0)).reshape(K, K, KCin, Cout)
    wt = jnp.pad(wt, ((0, 0), (0, 0), (0, 0), (0, Cp - Cout))).astype(jnp.bfloat16)
    b_p = jnp.pad(b, (0, Cp - Cout)).reshape(1, Cp).astype(jnp.float32)

    # 0/1 mask of valid (wo < Wo) rows of the flattened output plane.
    mask_col = jnp.tile(jnp.arange(Wp) < Wo, Ho).astype(jnp.float32).reshape(HoWp, 1)

    cparams = pltpu.CompilerParams(
        dimension_semantics=("parallel", "parallel"),
        vmem_limit_bytes=48 * 1024 * 1024)

    conv_kernel = _make_conv_kernel(K, Wp, HoWp, KCin, Cp)
    y, ssum, ssq = pl.pallas_call(
        conv_kernel,
        out_shape=(
            jax.ShapeDtypeStruct((N, Do, HoWp, Cp), jnp.bfloat16),
            jax.ShapeDtypeStruct((N, Do, 1, Cp), jnp.float32),
            jax.ShapeDtypeStruct((N, Do, 1, Cp), jnp.float32),
        ),
        grid=(N, Do),
        in_specs=[
            # whole-sample padded slab pinned across the depth axis
            pl.BlockSpec((1, Dp, plane, KCin), lambda n, do: (n, 0, 0, 0)),
            pl.BlockSpec((K, K, KCin, Cp), lambda n, do: (0, 0, 0, 0)),
            pl.BlockSpec((1, Cp), lambda n, do: (0, 0)),
            pl.BlockSpec((HoWp, 1), lambda n, do: (0, 0)),
        ],
        out_specs=(
            pl.BlockSpec((1, 1, HoWp, Cp), lambda n, do: (n, do, 0, 0)),
            pl.BlockSpec((1, 1, 1, Cp), lambda n, do: (n, do, 0, 0)),
            pl.BlockSpec((1, 1, 1, Cp), lambda n, do: (n, do, 0, 0)),
        ),
        compiler_params=cparams,
    )(x_fold, wt, b_p, mask_col)

    # ---- BatchNorm batch statistics: tiny per-channel math, plain JAX ----
    M = N * Do * Ho * Wo
    total = jnp.sum(ssum, axis=(0, 1, 2))
    total_sq = jnp.sum(ssq, axis=(0, 1, 2))
    mean = total / M
    var = jnp.maximum(total_sq / M - mean * mean, 0.0)          # biased variance
    gamma_p = jnp.pad(gamma, (0, Cp - Cout))
    beta_p = jnp.pad(beta, (0, Cp - Cout))
    inv = jax.lax.rsqrt(var + eps)
    scale = (gamma_p * inv).astype(jnp.float32).reshape(1, 1, 1, Cp)
    shift = (beta_p - mean * gamma_p * inv).astype(jnp.float32).reshape(1, 1, 1, Cp)

    out = pl.pallas_call(
        _affine_kernel,
        out_shape=jax.ShapeDtypeStruct((N, Do, HoWp, Cp), jnp.float32),
        grid=(N, Do),
        in_specs=[
            pl.BlockSpec((1, 1, HoWp, Cp), lambda n, do: (n, do, 0, 0)),
            pl.BlockSpec((1, 1, 1, Cp), lambda n, do: (0, 0, 0, 0)),
            pl.BlockSpec((1, 1, 1, Cp), lambda n, do: (0, 0, 0, 0)),
        ],
        out_specs=pl.BlockSpec((1, 1, HoWp, Cp), lambda n, do: (n, do, 0, 0)),
        compiler_params=cparams,
    )(y, scale, shift)

    # TODO(synk): a fused consumer should keep the NDHWC (lane-dense) output;
    # the trailing un-pad + NCDHW transpose exists only to match the PyTorch
    # module's output layout.
    out = out.reshape(N, Do, Ho, Wp, Cp)[:, :, :, :Wo, :Cout]
    return jnp.transpose(out, (0, 4, 1, 2, 3))


# --------------------------------------------------------------------------- #
# Pure-JAX reference (f32) for validation                                      #
# --------------------------------------------------------------------------- #
def _reference_forward(params, x, *, padding=0, eps=1e-5):
    w, b = params["w"], params["b"]
    gamma, beta = params["gamma"], params["beta"]
    dn = jax.lax.conv_dimension_numbers(x.shape, w.shape, ("NCDHW", "OIDHW", "NCDHW"))
    y = jax.lax.conv_general_dilated(
        x, w, window_strides=(1, 1, 1), padding=[(padding, padding)] * 3,
        dimension_numbers=dn, precision=jax.lax.Precision.HIGHEST)
    y = jnp.maximum(y + b.reshape(1, -1, 1, 1, 1), 0.0)
    mean = jnp.mean(y, axis=(0, 2, 3, 4), keepdims=True)
    var = jnp.var(y, axis=(0, 2, 3, 4), keepdims=True)
    return (gamma.reshape(1, -1, 1, 1, 1) * (y - mean) * jax.lax.rsqrt(var + eps)
            + beta.reshape(1, -1, 1, 1, 1))


if __name__ == "__main__":
    key = jax.random.PRNGKey(0)
    kx, kw, kb = jax.random.split(key, 3)

    N, Cin, D, H, W = 2, 4, 16, 16, 16
    Cout, K, padding = 32, 3, 0           # module defaults: kernel=3, stride=1, pad=0

    x = jax.random.normal(kx, (N, Cin, D, H, W), jnp.float32)
    fan_in = Cin * K ** 3
    bound = 1.0 / math.sqrt(fan_in)       # PyTorch Conv3d default init bounds
    params = {
        "w": jax.random.uniform(kw, (Cout, Cin, K, K, K), jnp.float32, -bound, bound),
        "b": jax.random.uniform(kb, (Cout,), jnp.float32, -bound, bound),
        "gamma": jnp.ones((Cout,), jnp.float32),
        "beta": jnp.zeros((Cout,), jnp.float32),
    }

    fwd = jax.jit(functools.partial(conv3x3x3_forward, kernel_size=K, padding=padding))
    out = jax.block_until_ready(fwd(params, x))

    assert out.shape == (N, Cout, D - K + 1, H - K + 1, W - K + 1), out.shape
    assert out.dtype == jnp.float32

    ref = _reference_forward(params, x, padding=padding)
    err = float(jnp.max(jnp.abs(out - ref)))
    assert err < 1e-1, f"max abs error vs f32 reference: {err}"

    print("KERNEL_OK")
</pallas_src>

<mosaic_0001>
module attributes {stable_mosaic.version = 11 : i64} {
  func.func @kernel(%arg0: i32, %arg1: i32, %arg2: memref<1x16x256x12xbf16, #tpu.memory_space<vmem>>, %arg3: memref<3x3x12x128xbf16, #tpu.memory_space<vmem>>, %arg4: memref<1x128xf32, #tpu.memory_space<vmem>>, %arg5: memref<224x1xf32, #tpu.memory_space<vmem>>, %arg6: memref<1x1x224x128xbf16, #tpu.memory_space<vmem>>, %arg7: memref<1x1x1x128xf32, #tpu.memory_space<vmem>>, %arg8: memref<1x1x1x128xf32, #tpu.memory_space<vmem>>) attributes {dimension_semantics = [#tpu.dimension_semantics<parallel>, #tpu.dimension_semantics<parallel>], iteration_bounds = array<i64: 2, 14>, scalar_prefetch = 0 : i64, scratch_operands = 0 : i64, tpu.core_type = #tpu.core_type<tc>, window_params = [{transform_indices = @transform_0, window_bounds = array<i64: 1, 16, 256, 12>}, {pipeline_mode = #tpu.pipeline_mode<synchronous>, transform_indices = @transform_1, window_bounds = array<i64: 3, 3, 12, 128>}, {pipeline_mode = #tpu.pipeline_mode<synchronous>, transform_indices = @transform_2, window_bounds = array<i64: 1, 128>}, {pipeline_mode = #tpu.pipeline_mode<synchronous>, transform_indices = @transform_3, window_bounds = array<i64: 224, 1>}, {transform_indices = @transform_4, window_bounds = array<i64: 1, 1, 224, 128>}, {transform_indices = @transform_5, window_bounds = array<i64: 1, 1, 1, 128>}, {transform_indices = @transform_6, window_bounds = array<i64: 1, 1, 1, 128>}]} {
    %c0_i32 = arith.constant 0 : i32
    %0 = arith.addi %arg1, %c0_i32 : i32
    %c0 = arith.constant 0 : index
    %1 = arith.index_cast %0 : i32 to index
    %c0_0 = arith.constant 0 : index
    %c0_1 = arith.constant 0 : index
    %2 = vector.load %arg2[%c0, %1, %c0_0, %c0_1] : memref<1x16x256x12xbf16, #tpu.memory_space<vmem>>, vector<1x1x224x12xbf16>
    %3 = vector.shape_cast %2 : vector<1x1x224x12xbf16> to vector<1x224x12xbf16>
    %4 = vector.shape_cast %3 : vector<1x224x12xbf16> to vector<224x12xbf16>
    %c0_2 = arith.constant 0 : index
    %c0_3 = arith.constant 0 : index
    %c0_4 = arith.constant 0 : index
    %c0_5 = arith.constant 0 : index
    %5 = vector.load %arg3[%c0_2, %c0_3, %c0_4, %c0_5] : memref<3x3x12x128xbf16, #tpu.memory_space<vmem>>, vector<1x1x12x128xbf16>
    %6 = vector.shape_cast %5 : vector<1x1x12x128xbf16> to vector<12x128xbf16>
    %cst = arith.constant dense<0.000000e+00> : vector<224x128xf32>
    %7 = tpu.matmul %4, %6, %cst {dimension_numbers = #tpu.dot_dimension_numbers<[1], [0], [0], [1], [0, 0, 1, 1], [], []>} : vector<224x12xbf16>, vector<12x128xbf16>, vector<224x128xf32> -> vector<224x128xf32>
    %c0_i32_6 = arith.constant 0 : i32
    %8 = arith.addi %arg1, %c0_i32_6 : i32
    %c0_7 = arith.constant 0 : index
    %9 = arith.index_cast %8 : i32 to index
    %c16 = arith.constant 16 : index
    %c0_8 = arith.constant 0 : index
    %10 = vector.load %arg2[%c0_7, %9, %c16, %c0_8] : memref<1x16x256x12xbf16, #tpu.memory_space<vmem>>, vector<1x1x224x12xbf16>
    %11 = vector.shape_cast %10 : vector<1x1x224x12xbf16> to vector<1x224x12xbf16>
    %12 = vector.shape_cast %11 : vector<1x224x12xbf16> to vector<224x12xbf16>
    %c0_9 = arith.constant 0 : index
    %c1 = arith.constant 1 : index
    %c0_10 = arith.constant 0 : index
    %c0_11 = arith.constant 0 : index
    %13 = vector.load %arg3[%c0_9, %c1, %c0_10, %c0_11] : memref<3x3x12x128xbf16, #tpu.memory_space<vmem>>, vector<1x1x12x128xbf16>
    %14 = vector.shape_cast %13 : vector<1x1x12x128xbf16> to vector<12x128xbf16>
    %cst_12 = arith.constant dense<0.000000e+00> : vector<224x128xf32>
    %15 = tpu.matmul %12, %14, %cst_12 {dimension_numbers = #tpu.dot_dimension_numbers<[1], [0], [0], [1], [0, 0, 1, 1], [], []>} : vector<224x12xbf16>, vector<12x128xbf16>, vector<224x128xf32> -> vector<224x128xf32>
    %16 = arith.addf %7, %15 : vector<224x128xf32>
    %c0_i32_13 = arith.constant 0 : i32
    %17 = arith.addi %arg1, %c0_i32_13 : i32
    %c0_14 = arith.constant 0 : index
    %18 = arith.index_cast %17 : i32 to index
    %c32 = arith.constant 32 : index
    %c0_15 = arith.constant 0 : index
    %19 = vector.load %arg2[%c0_14, %18, %c32, %c0_15] : memref<1x16x256x12xbf16, #tpu.memory_space<vmem>>, vector<1x1x224x12xbf16>
    %20 = vector.shape_cast %19 : vector<1x1x224x12xbf16> to vector<1x224x12xbf16>
    %21 = vector.shape_cast %20 : vector<1x224x12xbf16> to vector<224x12xbf16>
    %c0_16 = arith.constant 0 : index
    %c2 = arith.constant 2 : index
    %c0_17 = arith.constant 0 : index
    %c0_18 = arith.constant 0 : index
    %22 = vector.load %arg3[%c0_16, %c2, %c0_17, %c0_18] : memref<3x3x12x128xbf16, #tpu.memory_space<vmem>>, vector<1x1x12x128xbf16>
    %23 = vector.shape_cast %22 : vector<1x1x12x128xbf16> to vector<12x128xbf16>
    %cst_19 = arith.constant dense<0.000000e+00> : vector<224x128xf32>
    %24 = tpu.matmul %21, %23, %cst_19 {dimension_numbers = #tpu.dot_dimension_numbers<[1], [0], [0], [1], [0, 0, 1, 1], [], []>} : vector<224x12xbf16>, vector<12x128xbf16>, vector<224x128xf32> -> vector<224x128xf32>
    %25 = arith.addf %16, %24 : vector<224x128xf32>
    %c1_i32 = arith.constant 1 : i32
    %26 = arith.addi %arg1, %c1_i32 : i32
    %c0_20 = arith.constant 0 : index
    %27 = arith.index_cast %26 : i32 to index
    %c0_21 = arith.constant 0 : index
    %c0_22 = arith.constant 0 : index
    %28 = vector.load %arg2[%c0_20, %27, %c0_21, %c0_22] : memref<1x16x256x12xbf16, #tpu.memory_space<vmem>>, vector<1x1x224x12xbf16>
    %29 = vector.shape_cast %28 : vector<1x1x224x12xbf16> to vector<1x224x12xbf16>
    %30 = vector.shape_cast %29 : vector<1x224x12xbf16> to vector<224x12xbf16>
    %c1_23 = arith.constant 1 : index
    %c0_24 = arith.constant 0 : index
    %c0_25 = arith.constant 0 : index
    %c0_26 = arith.constant 0 : index
    %31 = vector.load %arg3[%c1_23, %c0_24, %c0_25, %c0_26] : memref<3x3x12x128xbf16, #tpu.memory_space<vmem>>, vector<1x1x12x128xbf16>
    %32 = vector.shape_cast %31 : vector<1x1x12x128xbf16> to vector<12x128xbf16>
    %cst_27 = arith.constant dense<0.000000e+00> : vector<224x128xf32>
    %33 = tpu.matmul %30, %32, %cst_27 {dimension_numbers = #tpu.dot_dimension_numbers<[1], [0], [0], [1], [0, 0, 1, 1], [], []>} : vector<224x12xbf16>, vector<12x128xbf16>, vector<224x128xf32> -> vector<224x128xf32>
    %34 = arith.addf %25, %33 : vector<224x128xf32>
    %c1_i32_28 = arith.constant 1 : i32
    %35 = arith.addi %arg1, %c1_i32_28 : i32
    %c0_29 = arith.constant 0 : index
    %36 = arith.index_cast %35 : i32 to index
    %c16_30 = arith.constant 16 : index
    %c0_31 = arith.constant 0 : index
    %37 = vector.load %arg2[%c0_29, %36, %c16_30, %c0_31] : memref<1x16x256x12xbf16, #tpu.memory_space<vmem>>, vector<1x1x224x12xbf16>
    %38 = vector.shape_cast %37 : vector<1x1x224x12xbf16> to vector<1x224x12xbf16>
    %39 = vector.shape_cast %38 : vector<1x224x12xbf16> to vector<224x12xbf16>
    %c1_32 = arith.constant 1 : index
    %c1_33 = arith.constant 1 : index
    %c0_34 = arith.constant 0 : index
    %c0_35 = arith.constant 0 : index
    %40 = vector.load %arg3[%c1_32, %c1_33, %c0_34, %c0_35] : memref<3x3x12x128xbf16, #tpu.memory_space<vmem>>, vector<1x1x12x128xbf16>
    %41 = vector.shape_cast %40 : vector<1x1x12x128xbf16> to vector<12x128xbf16>
    %cst_36 = arith.constant dense<0.000000e+00> : vector<224x128xf32>
    %42 = tpu.matmul %39, %41, %cst_36 {dimension_numbers = #tpu.dot_dimension_numbers<[1], [0], [0], [1], [0, 0, 1, 1], [], []>} : vector<224x12xbf16>, vector<12x128xbf16>, vector<224x128xf32> -> vector<224x128xf32>
    %43 = arith.addf %34, %42 : vector<224x128xf32>
    %c1_i32_37 = arith.constant 1 : i32
    %44 = arith.addi %arg1, %c1_i32_37 : i32
    %c0_38 = arith.constant 0 : index
    %45 = arith.index_cast %44 : i32 to index
    %c32_39 = arith.constant 32 : index
    %c0_40 = arith.constant 0 : index
    %46 = vector.load %arg2[%c0_38, %45, %c32_39, %c0_40] : memref<1x16x256x12xbf16, #tpu.memory_space<vmem>>, vector<1x1x224x12xbf16>
    %47 = vector.shape_cast %46 : vector<1x1x224x12xbf16> to vector<1x224x12xbf16>
    %48 = vector.shape_cast %47 : vector<1x224x12xbf16> to vector<224x12xbf16>
    %c1_41 = arith.constant 1 : index
    %c2_42 = arith.constant 2 : index
    %c0_43 = arith.constant 0 : index
    %c0_44 = arith.constant 0 : index
    %49 = vector.load %arg3[%c1_41, %c2_42, %c0_43, %c0_44] : memref<3x3x12x128xbf16, #tpu.memory_space<vmem>>, vector<1x1x12x128xbf16>
    %50 = vector.shape_cast %49 : vector<1x1x12x128xbf16> to vector<12x128xbf16>
    %cst_45 = arith.constant dense<0.000000e+00> : vector<224x128xf32>
    %51 = tpu.matmul %48, %50, %cst_45 {dimension_numbers = #tpu.dot_dimension_numbers<[1], [0], [0], [1], [0, 0, 1, 1], [], []>} : vector<224x12xbf16>, vector<12x128xbf16>, vector<224x128xf32> -> vector<224x128xf32>
    %52 = arith.addf %43, %51 : vector<224x128xf32>
    %c2_i32 = arith.constant 2 : i32
    %53 = arith.addi %arg1, %c2_i32 : i32
    %c0_46 = arith.constant 0 : index
    %54 = arith.index_cast %53 : i32 to index
    %c0_47 = arith.constant 0 : index
    %c0_48 = arith.constant 0 : index
    %55 = vector.load %arg2[%c0_46, %54, %c0_47, %c0_48] : memref<1x16x256x12xbf16, #tpu.memory_space<vmem>>, vector<1x1x224x12xbf16>
    %56 = vector.shape_cast %55 : vector<1x1x224x12xbf16> to vector<1x224x12xbf16>
    %57 = vector.shape_cast %56 : vector<1x224x12xbf16> to vector<224x12xbf16>
    %c2_49 = arith.constant 2 : index
    %c0_50 = arith.constant 0 : index
    %c0_51 = arith.constant 0 : index
    %c0_52 = arith.constant 0 : index
    %58 = vector.load %arg3[%c2_49, %c0_50, %c0_51, %c0_52] : memref<3x3x12x128xbf16, #tpu.memory_space<vmem>>, vector<1x1x12x128xbf16>
    %59 = vector.shape_cast %58 : vector<1x1x12x128xbf16> to vector<12x128xbf16>
    %cst_53 = arith.constant dense<0.000000e+00> : vector<224x128xf32>
    %60 = tpu.matmul %57, %59, %cst_53 {dimension_numbers = #tpu.dot_dimension_numbers<[1], [0], [0], [1], [0, 0, 1, 1], [], []>} : vector<224x12xbf16>, vector<12x128xbf16>, vector<224x128xf32> -> vector<224x128xf32>
    %61 = arith.addf %52, %60 : vector<224x128xf32>
    %c2_i32_54 = arith.constant 2 : i32
    %62 = arith.addi %arg1, %c2_i32_54 : i32
    %c0_55 = arith.constant 0 : index
    %63 = arith.index_cast %62 : i32 to index
    %c16_56 = arith.constant 16 : index
    %c0_57 = arith.constant 0 : index
    %64 = vector.load %arg2[%c0_55, %63, %c16_56, %c0_57] : memref<1x16x256x12xbf16, #tpu.memory_space<vmem>>, vector<1x1x224x12xbf16>
    %65 = vector.shape_cast %64 : vector<1x1x224x12xbf16> to vector<1x224x12xbf16>
    %66 = vector.shape_cast %65 : vector<1x224x12xbf16> to vector<224x12xbf16>
    %c2_58 = arith.constant 2 : index
    %c1_59 = arith.constant 1 : index
    %c0_60 = arith.constant 0 : index
    %c0_61 = arith.constant 0 : index
    %67 = vector.load %arg3[%c2_58, %c1_59, %c0_60, %c0_61] : memref<3x3x12x128xbf16, #tpu.memory_space<vmem>>, vector<1x1x12x128xbf16>
    %68 = vector.shape_cast %67 : vector<1x1x12x128xbf16> to vector<12x128xbf16>
    %cst_62 = arith.constant dense<0.000000e+00> : vector<224x128xf32>
    %69 = tpu.matmul %66, %68, %cst_62 {dimension_numbers = #tpu.dot_dimension_numbers<[1], [0], [0], [1], [0, 0, 1, 1], [], []>} : vector<224x12xbf16>, vector<12x128xbf16>, vector<224x128xf32> -> vector<224x128xf32>
    %70 = arith.addf %61, %69 : vector<224x128xf32>
    %c2_i32_63 = arith.constant 2 : i32
    %71 = arith.addi %arg1, %c2_i32_63 : i32
    %c0_64 = arith.constant 0 : index
    %72 = arith.index_cast %71 : i32 to index
    %c32_65 = arith.constant 32 : index
    %c0_66 = arith.constant 0 : index
    %73 = vector.load %arg2[%c0_64, %72, %c32_65, %c0_66] : memref<1x16x256x12xbf16, #tpu.memory_space<vmem>>, vector<1x1x224x12xbf16>
    %74 = vector.shape_cast %73 : vector<1x1x224x12xbf16> to vector<1x224x12xbf16>
    %75 = vector.shape_cast %74 : vector<1x224x12xbf16> to vector<224x12xbf16>
    %c2_67 = arith.constant 2 : index
    %c2_68 = arith.constant 2 : index
    %c0_69 = arith.constant 0 : index
    %c0_70 = arith.constant 0 : index
    %76 = vector.load %arg3[%c2_67, %c2_68, %c0_69, %c0_70] : memref<3x3x12x128xbf16, #tpu.memory_space<vmem>>, vector<1x1x12x128xbf16>
    %77 = vector.shape_cast %76 : vector<1x1x12x128xbf16> to vector<12x128xbf16>
    %cst_71 = arith.constant dense<0.000000e+00> : vector<224x128xf32>
    %78 = tpu.matmul %75, %77, %cst_71 {dimension_numbers = #tpu.dot_dimension_numbers<[1], [0], [0], [1], [0, 0, 1, 1], [], []>} : vector<224x12xbf16>, vector<12x128xbf16>, vector<224x128xf32> -> vector<224x128xf32>
    %79 = arith.addf %70, %78 : vector<224x128xf32>
    %c0_72 = arith.constant 0 : index
    %c0_73 = arith.constant 0 : index
    %80 = vector.load %arg4[%c0_72, %c0_73] : memref<1x128xf32, #tpu.memory_space<vmem>>, vector<1x128xf32>
    %81 = vector.broadcast %80 : vector<1x128xf32> to vector<224x128xf32>
    %82 = arith.addf %79, %81 : vector<224x128xf32>
    %cst_74 = arith.constant 0.000000e+00 : f32
    %83 = vector.broadcast %cst_74 : f32 to vector<224x128xf32>
    %84 = arith.maximumf %82, %83 : vector<224x128xf32>
    %c0_75 = arith.constant 0 : index
    %c0_76 = arith.constant 0 : index
    %85 = vector.load %arg5[%c0_75, %c0_76] : memref<224x1xf32, #tpu.memory_space<vmem>>, vector<224x1xf32>
    %86 = vector.broadcast %85 : vector<224x1xf32> to vector<224x128xf32>
    %87 = arith.mulf %84, %86 : vector<224x128xf32>
    %cst_77 = arith.constant dense<0.000000e+00> : vector<128xf32>
    %88 = vector.multi_reduction <add>, %87, %cst_77 [0] : vector<224x128xf32> to vector<128xf32>
    %89 = vector.shape_cast %88 : vector<128xf32> to vector<1x128xf32>
    %90 = vector.shape_cast %89 : vector<1x128xf32> to vector<1x1x1x128xf32>
    %c0_78 = arith.constant 0 : index
    %c0_79 = arith.constant 0 : index
    %c0_80 = arith.constant 0 : index
    %c0_81 = arith.constant 0 : index
    %91 = vector.load %arg7[%c0_78, %c0_79, %c0_80, %c0_81] : memref<1x1x1x128xf32, #tpu.memory_space<vmem>>, vector<1x1x1x128xf32>
    tpu.vector_store %arg7[%c0_78, %c0_79, %c0_80, %c0_81], %90 {strides = array<i32>} : memref<1x1x1x128xf32, #tpu.memory_space<vmem>>, vector<1x1x1x128xf32>,
    %92 = arith.mulf %87, %84 : vector<224x128xf32>
    %cst_82 = arith.constant dense<0.000000e+00> : vector<128xf32>
    %93 = vector.multi_reduction <add>, %92, %cst_82 [0] : vector<224x128xf32> to vector<128xf32>
    %94 = vector.shape_cast %93 : vector<128xf32> to vector<1x128xf32>
    %95 = vector.shape_cast %94 : vector<1x128xf32> to vector<1x1x1x128xf32>
    %c0_83 = arith.constant 0 : index
    %c0_84 = arith.constant 0 : index
    %c0_85 = arith.constant 0 : index
    %c0_86 = arith.constant 0 : index
    %96 = vector.load %arg8[%c0_83, %c0_84, %c0_85, %c0_86] : memref<1x1x1x128xf32, #tpu.memory_space<vmem>>, vector<1x1x1x128xf32>
    tpu.vector_store %arg8[%c0_83, %c0_84, %c0_85, %c0_86], %95 {strides = array<i32>} : memref<1x1x1x128xf32, #tpu.memory_space<vmem>>, vector<1x1x1x128xf32>,
    %97 = arith.truncf %84 : vector<224x128xf32> to vector<224x128xbf16>
    %98 = vector.shape_cast %97 : vector<224x128xbf16> to vector<1x1x224x128xbf16>
    %c0_87 = arith.constant 0 : index
    %c0_88 = arith.constant 0 : index
    %c0_89 = arith.constant 0 : index
    %c0_90 = arith.constant 0 : index
    %99 = vector.load %arg6[%c0_87, %c0_88, %c0_89, %c0_90] : memref<1x1x224x128xbf16, #tpu.memory_space<vmem>>, vector<1x1x224x128xbf16>
    tpu.vector_store %arg6[%c0_87, %c0_88, %c0_89, %c0_90], %98 {strides = array<i32>} : memref<1x1x224x128xbf16, #tpu.memory_space<vmem>>, vector<1x1x224x128xbf16>,
    return
  }
  func.func @transform_0(%arg0: i32, %arg1: i32) -> (i32, i32, i32, i32) {
    %c0_i32 = arith.constant 0 : i32
    %c0_i32_0 = arith.constant 0 : i32
    %c0_i32_1 = arith.constant 0 : i32
    %c0_i32_2 = arith.constant 0 : i32
    return %arg0, %c0_i32, %c0_i32_0, %c0_i32_1 : i32, i32, i32, i32
  }
  func.func @transform_1(%arg0: i32, %arg1: i32) -> (i32, i32, i32, i32) {
    %c0_i32 = arith.constant 0 : i32
    %c0_i32_0 = arith.constant 0 : i32
    %c0_i32_1 = arith.constant 0 : i32
    %c0_i32_2 = arith.constant 0 : i32
    %c0_i32_3 = arith.constant 0 : i32
    return %c0_i32, %c0_i32_0, %c0_i32_1, %c0_i32_2 : i32, i32, i32, i32
  }
  func.func @transform_2(%arg0: i32, %arg1: i32) -> (i32, i32) {
    %c0_i32 = arith.constant 0 : i32
    %c0_i32_0 = arith.constant 0 : i32
    %c0_i32_1 = arith.constant 0 : i32
    return %c0_i32, %c0_i32_0 : i32, i32
  }
  func.func @transform_3(%arg0: i32, %arg1: i32) -> (i32, i32) {
    %c0_i32 = arith.constant 0 : i32
    %c0_i32_0 = arith.constant 0 : i32
    %c0_i32_1 = arith.constant 0 : i32
    return %c0_i32, %c0_i32_0 : i32, i32
  }
  func.func @transform_4(%arg0: i32, %arg1: i32) -> (i32, i32, i32, i32) {
    %c0_i32 = arith.constant 0 : i32
    %c0_i32_0 = arith.constant 0 : i32
    %c0_i32_1 = arith.constant 0 : i32
    return %arg0, %arg1, %c0_i32, %c0_i32_0 : i32, i32, i32, i32
  }
  func.func @transform_5(%arg0: i32, %arg1: i32) -> (i32, i32, i32, i32) {
    %c0_i32 = arith.constant 0 : i32
    %c0_i32_0 = arith.constant 0 : i32
    %c0_i32_1 = arith.constant 0 : i32
    return %arg0, %arg1, %c0_i32, %c0_i32_0 : i32, i32, i32, i32
  }
  func.func @transform_6(%arg0: i32, %arg1: i32) -> (i32, i32, i32, i32) {
    %c0_i32 = arith.constant 0 : i32
    %c0_i32_0 = arith.constant 0 : i32
    %c0_i32_1 = arith.constant 0 : i32
    return %arg0, %arg1, %c0_i32, %c0_i32_0 : i32, i32, i32, i32
  }
}

module attributes {stable_mosaic.version = 11 : i64} {
  func.func @_affine_kernel(%arg0: i32, %arg1: i32, %arg2: memref<1x1x224x128xbf16, #tpu.memory_space<vmem>>, %arg3: memref<1x1x1x128xf32, #tpu.memory_space<vmem>>, %arg4: memref<1x1x1x128xf32, #tpu.memory_space<vmem>>, %arg5: memref<1x1x224x128xf32, #tpu.memory_space<vmem>>) attributes {dimension_semantics = [#tpu.dimension_semantics<parallel>, #tpu.dimension_semantics<parallel>], iteration_bounds = array<i64: 2, 14>, scalar_prefetch = 0 : i64, scratch_operands = 0 : i64, tpu.core_type = #tpu.core_type<tc>, window_params = [{transform_indices = @transform_0, window_bounds = array<i64: 1, 1, 224, 128>}, {pipeline_mode = #tpu.pipeline_mode<synchronous>, transform_indices = @transform_1, window_bounds = array<i64: 1, 1, 1, 128>}, {pipeline_mode = #tpu.pipeline_mode<synchronous>, transform_indices = @transform_2, window_bounds = array<i64: 1, 1, 1, 128>}, {transform_indices = @transform_3, window_bounds = array<i64: 1, 1, 224, 128>}]} {
    %c0 = arith.constant 0 : index
    %c0_0 = arith.constant 0 : index
    %c0_1 = arith.constant 0 : index
    %c0_2 = arith.constant 0 : index
    %0 = vector.load %arg2[%c0, %c0_0, %c0_1, %c0_2] : memref<1x1x224x128xbf16, #tpu.memory_space<vmem>>, vector<1x1x224x128xbf16>
    %1 = arith.extf %0 : vector<1x1x224x128xbf16> to vector<1x1x224x128xf32>
    %c0_3 = arith.constant 0 : index
    %c0_4 = arith.constant 0 : index
    %c0_5 = arith.constant 0 : index
    %c0_6 = arith.constant 0 : index
    %2 = vector.load %arg3[%c0_3, %c0_4, %c0_5, %c0_6] : memref<1x1x1x128xf32, #tpu.memory_space<vmem>>, vector<1x1x1x128xf32>
    %3 = vector.broadcast %2 : vector<1x1x1x128xf32> to vector<1x1x224x128xf32>
    %4 = arith.mulf %1, %3 : vector<1x1x224x128xf32>
    %c0_7 = arith.constant 0 : index
    %c0_8 = arith.constant 0 : index
    %c0_9 = arith.constant 0 : index
    %c0_10 = arith.constant 0 : index
    %5 = vector.load %arg4[%c0_7, %c0_8, %c0_9, %c0_10] : memref<1x1x1x128xf32, #tpu.memory_space<vmem>>, vector<1x1x1x128xf32>
    %6 = vector.broadcast %5 : vector<1x1x1x128xf32> to vector<1x1x224x128xf32>
    %7 = arith.addf %4, %6 : vector<1x1x224x128xf32>
    %c0_11 = arith.constant 0 : index
    %c0_12 = arith.constant 0 : index
    %c0_13 = arith.constant 0 : index
    %c0_14 = arith.constant 0 : index
    %8 = vector.load %arg5[%c0_11, %c0_12, %c0_13, %c0_14] : memref<1x1x224x128xf32, #tpu.memory_space<vmem>>, vector<1x1x224x128xf32>
    tpu.vector_store %arg5[%c0_11, %c0_12, %c0_13, %c0_14], %7 {strides = array<i32>} : memref<1x1x224x128xf32, #tpu.memory_space<vmem>>, vector<1x1x224x128xf32>,
    return
  }
  func.func @transform_0(%arg0: i32, %arg1: i32) -> (i32, i32, i32, i32) {
    %c0_i32 = arith.constant 0 : i32
    %c0_i32_0 = arith.constant 0 : i32
    %c0_i32_1 = arith.constant 0 : i32
    return %arg0, %arg1, %c0_i32, %c0_i32_0 : i32, i32, i32, i32
  }
  func.func @transform_1(%arg0: i32, %arg1: i32) -> (i32, i32, i32, i32) {
    %c0_i32 = arith.constant 0 : i32
    %c0_i32_0 = arith.constant 0 : i32
    %c0_i32_1 = arith.constant 0 : i32
    %c0_i32_2 = arith.constant 0 : i32
    %c0_i32_3 = arith.constant 0 : i32
    return %c0_i32, %c0_i32_0, %c0_i32_1, %c0_i32_2 : i32, i32, i32, i32
  }
  func.func @transform_2(%arg0: i32, %arg1: i32) -> (i32, i32, i32, i32) {
    %c0_i32 = arith.constant 0 : i32
    %c0_i32_0 = arith.constant 0 : i32
    %c0_i32_1 = arith.constant 0 : i32
    %c0_i32_2 = arith.constant 0 : i32
    %c0_i32_3 = arith.constant 0 : i32
    return %c0_i32, %c0_i32_0, %c0_i32_1, %c0_i32_2 : i32, i32, i32, i32
  }
  func.func @transform_3(%arg0: i32, %arg1: i32) -> (i32, i32, i32, i32) {
    %c0_i32 = arith.constant 0 : i32
    %c0_i32_0 = arith.constant 0 : i32
    %c0_i32_1 = arith.constant 0 : i32
    return %arg0, %arg1, %c0_i32, %c0_i32_0 : i32, i32, i32, i32
  }
}

</mosaic_0001>

<bundles_post_ra>
// kernel: conv3x3x3_forward.3
= control target key start
LH: loop header
LB: loop body
LE: loop exit
PB: predicated region body
PF: predicated region fallthrough
CT: control target
= control target key end

     0   :  { %s632_s12 = smov 0   ;;  %s634_s13 = smov 0   ;;  %s795_s0 = inlined_call_operand.vmem [shape: bf16[2,14,224,128], index: 0, kind: input, shape index: {}]   ;;  %s796_s1 = inlined_call_operand.vmem [shape: f32[1,1,1,128], index: 1, kind: input, shape index: {}]   ;;  %s797_s2 = inlined_call_operand.vmem [shape: f32[1,1,1,128], index: 2, kind: input, shape index: {}]   ;;  %s798_s3 = inlined_call_operand.vmem [shape: f32[2,14,224,128], index: 3, kind: output, shape index: {}]  }
   0x1   :  { %s636_s14 = smov 0   ;;  %s638_s15 = smov 0  }
   0x2   :  { %s640_s16 = smov 0  }
   0x3 LB: > { %s22_s17 = sadd.s32 1, %s602_s14  ;;  %s25_s18 = sadd.s32 1, %s606_s15  ;;  %s610_s16 = sphi %s640_s16, %s13_s16   ;;  %s606_s15 = sphi %s638_s15, %s802_s15   ;;  %s602_s14 = sphi %s636_s14, %s801_s14   ;;  %s598_s13 = sphi %s634_s13, %s800_s13   ;;  %s594_s12 = sphi %s632_s12, %s799_s12  }
   0x4   : > { %p23_p0 = scmp.ge.s32.totalorder %s22_s17, 14  ;;  %p454_p1 = scmp.ge.s32.totalorder %s610_s16, 1 }
   0x5   : > { %p157_p2 = scmp.lt.s32.totalorder %s610_s16, 29 }
   0x6   : > { %s804_s17 = smov (%p23_p0, %s22_s17), 0  ;;  %s806_s18 = smov (!%p23_p0, %s25_s18), %s606_s15 }
   0x7   : > { %p158_p3 = pnand %p454_p1, %p157_p2  ;;  %p27_p4 = scmp.ge.s32.totalorder %s806_s18, 2 }
   0x8   : > { %p189_p5 = scmp.lt.s32.totalorder (!%p158_p3), %s598_s13, 1  ;;  %p191_p6 = scmp.lt.s32.totalorder (!%p158_p3), %s594_s12, 13 }
   0x9   : > { %s808_s18 = smov (%p27_p4, %s806_s18), 0  ;;  %161 = sbr.rel (%p158_p3) target bundleno = 56 (0x38), region = 32 }
   0xe   : > { %s810_s13 = smov (!%p189_p5, %s598_s13), 1  ;;  %s812_s12 = smov (!%p191_p6, %s594_s12), 13  ;;  %v670_v0 = vld [vmem:[%s796_s1] ss:$0 sm:$0xff] }
   0xf   : > { %s529_s19 = smul.u32 392, %s810_s13  ;;  %v678_v5 = vld [vmem:[%s797_s2] ss:$0 sm:$0xff] }
  0x10   : > { %s528_s20 = smul.u32 28, %s812_s12 }
  0x12   : > { %s195_s21 = sadd.s32 %s529_s19, %s528_s20 }
  0x13   : > { %s455_s22 = sshll.u32 %s195_s21, 2  ;;  %s456_s28 = sshll.u32 %s195_s21, 3 }
  0x14   : > { %s665_s25 = scalar_lea.vmem %s795_s0, %s455_s22  ;;  %s688_s6 = scalar_lea.vmem %s798_s3, %s456_s28 }
  0x15   : > { %v460_v1 = vld [vmem:[%s665_s25] sm:$0xff]   ;;  %v515_v2 = vld [vmem:[%s665_s25 + $0x8] sm:$0xff]   ;;  %v516_v3 = vld [vmem:[%s665_s25 + $0x10] sm:$0xff]  }
  0x16   : > { %v461_v4 = vunpack.c.l.bf16 %v460_v1  ;;  %v462_v6 = vunpack.c.h.bf16 %v460_v1  ;;  %v465_v7 = vunpack.c.l.bf16 %v515_v2  ;;  %v466_v8 = vunpack.c.h.bf16 %v515_v2  ;;  %v517_v9 = vld [vmem:[%s665_s25 + $0x18] sm:$0xff]   ;;  %v518_v20 = vld [vmem:[%s665_s25 + $0x20] sm:$0xff]   ;;  %v519_v21 = vld [vmem:[%s665_s25 + $0x28] sm:$0xff]  }
  0x17   : > { %v469_v10 = vunpack.c.l.bf16 %v516_v3  ;;  %v470_v11 = vunpack.c.h.bf16 %v516_v3  ;;  %v473_v12 = vunpack.c.l.bf16 %v517_v9  ;;  %v474_v13 = vunpack.c.h.bf16 %v517_v9  ;;  %v520_v26 = vld [vmem:[%s665_s25 + $0x30] sm:$0xff]   ;;  %v521_v27 = vld [vmem:[%s665_s25 + $0x38] sm:$0xff]   ;;  %v522_v46 = vld [vmem:[%s665_s25 + $0x40] sm:$0xff]  }
  0x18   : > { %v267_v14 = vmul.f32 %v670_v0, %v461_v4  ;;  %v268_v15 = vmul.f32 %v670_v0, %v462_v6  ;;  %v269_v16 = vmul.f32 %v670_v0, %v465_v7  ;;  %v270_v17 = vmul.f32 %v670_v0, %v466_v8  ;;  %v523_v47 = vld [vmem:[%s665_s25 + $0x48] sm:$0xff]   ;;  %v524_v53 = vld [vmem:[%s665_s25 + $0x50] sm:$0xff]   ;;  %v525_v61 = vld [vmem:[%s665_s25 + $0x58] sm:$0xff]  }
  0x19   : > { %v271_v18 = vmul.f32 %v670_v0, %v469_v10  ;;  %v272_v19 = vmul.f32 %v670_v0, %v470_v11  ;;  %v273_v25 = vmul.f32 %v670_v0, %v473_v12  ;;  %v274_v30 = vmul.f32 %v670_v0, %v474_v13  ;;  %v526_v6 = vld [vmem:[%s665_s25 + $0x60] sm:$0xff]   ;;  %v527_v13 = vld [vmem:[%s665_s25 + $0x68] sm:$0xff]  }
  0x1a   : > { %v299_v22 = vadd.f32 %v678_v5, %v267_v14  ;;  %v300_v23 = vadd.f32 %v678_v5, %v268_v15  ;;  %v301_v24 = vadd.f32 %v678_v5, %v269_v16  ;;  %v302_v28 = vadd.f32 %v678_v5, %v270_v17 }
  0x1b   : > { %v303_v29 = vadd.f32 %v678_v5, %v271_v18  ;;  %v477_v31 = vunpack.c.l.bf16 %v518_v20  ;;  %v478_v32 = vunpack.c.h.bf16 %v518_v20  ;;  %v481_v33 = vunpack.c.l.bf16 %v519_v21 }
  0x1c   : > { %327 = vst [vmem:[%s688_s6] sm:$0xff] %v299_v22  ;;  %v482_v34 = vunpack.c.h.bf16 %v519_v21  ;;  %v304_v35 = vadd.f32 %v678_v5, %v272_v19  ;;  %v485_v36 = vunpack.c.l.bf16 %v520_v26  ;;  %v486_v37 = vunpack.c.h.bf16 %v520_v26 }
  0x1d   : > { %328 = vst [vmem:[%s688_s6 + $0x8] sm:$0xff] %v300_v23  ;;  %v489_v38 = vunpack.c.l.bf16 %v521_v27  ;;  %v305_v39 = vadd.f32 %v678_v5, %v273_v25  ;;  %v275_v40 = vmul.f32 %v670_v0, %v477_v31  ;;  %v276_v41 = vmul.f32 %v670_v0, %v478_v32 }
  0x1e   : > { %329 = vst [vmem:[%s688_s6 + $0x10] sm:$0xff] %v301_v24  ;;  %v277_v42 = vmul.f32 %v670_v0, %v481_v33  ;;  %v306_v43 = vadd.f32 %v678_v5, %v274_v30  ;;  %v278_v44 = vmul.f32 %v670_v0, %v482_v34  ;;  %v490_v45 = vunpack.c.h.bf16 %v521_v27 }
  0x1f   : > { %330 = vst [vmem:[%s688_s6 + $0x18] sm:$0xff] %v302_v28  ;;  %v307_v48 = vadd.f32 %v678_v5, %v275_v40  ;;  %v279_v49 = vmul.f32 %v670_v0, %v485_v36  ;;  %v308_v50 = vadd.f32 %v678_v5, %v276_v41  ;;  %v280_v51 = vmul.f32 %v670_v0, %v486_v37 }
  0x20   : > { %331 = vst [vmem:[%s688_s6 + $0x20] sm:$0xff] %v303_v29  ;;  %v281_v52 = vmul.f32 %v670_v0, %v489_v38  ;;  %v309_v54 = vadd.f32 %v678_v5, %v277_v42  ;;  %v493_v55 = vunpack.c.l.bf16 %v522_v46  ;;  %v494_v56 = vunpack.c.h.bf16 %v522_v46 }
  0x21   : > { %332 = vst [vmem:[%s688_s6 + $0x28] sm:$0xff] %v304_v35  ;;  %v497_v57 = vunpack.c.l.bf16 %v523_v47  ;;  %v310_v58 = vadd.f32 %v678_v5, %v278_v44  ;;  %v282_v59 = vmul.f32 %v670_v0, %v490_v45  ;;  %v498_v60 = vunpack.c.h.bf16 %v523_v47 }
  0x22   : > { %333 = vst [vmem:[%s688_s6 + $0x30] sm:$0xff] %v305_v39  ;;  %v311_v62 = vadd.f32 %v678_v5, %v279_v49  ;;  %v283_v63 = vmul.f32 %v670_v0, %v493_v55  ;;  %v501_v1 = vunpack.c.l.bf16 %v524_v53  ;;  %v312_v2 = vadd.f32 %v678_v5, %v280_v51 }
  0x23   : > { %334 = vst [vmem:[%s688_s6 + $0x38] sm:$0xff] %v306_v43  ;;  %v284_v3 = vmul.f32 %v670_v0, %v494_v56  ;;  %v502_v4 = vunpack.c.h.bf16 %v524_v53  ;;  %v313_v7 = vadd.f32 %v678_v5, %v281_v52  ;;  %v285_v8 = vmul.f32 %v670_v0, %v497_v57 }
  0x24   : > { %335 = vst [vmem:[%s688_s6 + $0x40] sm:$0xff] %v307_v48  ;;  %v505_v9 = vunpack.c.l.bf16 %v525_v61  ;;  %v314_v10 = vadd.f32 %v678_v5, %v282_v59  ;;  %v286_v11 = vmul.f32 %v670_v0, %v498_v60  ;;  %v506_v12 = vunpack.c.h.bf16 %v525_v61 }
  0x25   : > { %336 = vst [vmem:[%s688_s6 + $0x48] sm:$0xff] %v308_v50  ;;  %v315_v14 = vadd.f32 %v678_v5, %v283_v63  ;;  %v287_v15 = vmul.f32 %v670_v0, %v501_v1  ;;  %v509_v16 = vunpack.c.l.bf16 %v526_v6  ;;  %v316_v17 = vadd.f32 %v678_v5, %v284_v3 }
  0x26   : > { %337 = vst [vmem:[%s688_s6 + $0x50] sm:$0xff] %v309_v54  ;;  %v288_v18 = vmul.f32 %v670_v0, %v502_v4  ;;  %v510_v19 = vunpack.c.h.bf16 %v526_v6  ;;  %v317_v20 = vadd.f32 %v678_v5, %v285_v8  ;;  %v289_v21 = vmul.f32 %v670_v0, %v505_v9 }
  0x27   : > { %338 = vst [vmem:[%s688_s6 + $0x58] sm:$0xff] %v310_v58  ;;  %v513_v22 = vunpack.c.l.bf16 %v527_v13  ;;  %v318_v23 = vadd.f32 %v678_v5, %v286_v11  ;;  %v290_v24 = vmul.f32 %v670_v0, %v506_v12  ;;  %v514_v25 = vunpack.c.h.bf16 %v527_v13 }
  0x28   : > { %339 = vst [vmem:[%s688_s6 + $0x60] sm:$0xff] %v311_v62  ;;  %v319_v26 = vadd.f32 %v678_v5, %v287_v15  ;;  %v291_v27 = vmul.f32 %v670_v0, %v509_v16  ;;  %v320_v28 = vadd.f32 %v678_v5, %v288_v18  ;;  %v292_v29 = vmul.f32 %v670_v0, %v510_v19 }
  0x29   : > { %340 = vst [vmem:[%s688_s6 + $0x68] sm:$0xff] %v312_v2  ;;  %v321_v30 = vadd.f32 %v678_v5, %v289_v21  ;;  %v293_v31 = vmul.f32 %v670_v0, %v513_v22  ;;  %v322_v32 = vadd.f32 %v678_v5, %v290_v24  ;;  %v294_v33 = vmul.f32 %v670_v0, %v514_v25 }
  0x2a   : > { %341 = vst [vmem:[%s688_s6 + $0x70] sm:$0xff] %v313_v7  ;;  %v323_v34 = vadd.f32 %v678_v5, %v291_v27  ;;  %v324_v35 = vadd.f32 %v678_v5, %v292_v29 }
  0x2b   : > { %342 = vst [vmem:[%s688_s6 + $0x78] sm:$0xff] %v314_v10  ;;  %v325_v36 = vadd.f32 %v678_v5, %v293_v31  ;;  %v326_v37 = vadd.f32 %v678_v5, %v294_v33 }
  0x2c   : > { %343 = vst [vmem:[%s688_s6 + $0x80] sm:$0xff] %v315_v14 }
  0x2d   : > { %344 = vst [vmem:[%s688_s6 + $0x88] sm:$0xff] %v316_v17 }
  0x2e   : > { %345 = vst [vmem:[%s688_s6 + $0x90] sm:$0xff] %v317_v20 }
  0x2f   : > { %346 = vst [vmem:[%s688_s6 + $0x98] sm:$0xff] %v318_v23 }
  0x30   : > { %347 = vst [vmem:[%s688_s6 + $0xa0] sm:$0xff] %v319_v26 }
  0x31   : > { %348 = vst [vmem:[%s688_s6 + $0xa8] sm:$0xff] %v320_v28 }
  0x32   : > { %349 = vst [vmem:[%s688_s6 + $0xb0] sm:$0xff] %v321_v30 }
  0x33   : > { %350 = vst [vmem:[%s688_s6 + $0xb8] sm:$0xff] %v322_v32 }
  0x34   : > { %351 = vst [vmem:[%s688_s6 + $0xc0] sm:$0xff] %v323_v34 }
  0x35   : > { %352 = vst [vmem:[%s688_s6 + $0xc8] sm:$0xff] %v324_v35 }
  0x36   : > { %353 = vst [vmem:[%s688_s6 + $0xd0] sm:$0xff] %v325_v36 }
  0x37   : > { %354 = vst [vmem:[%s688_s6 + $0xd8] sm:$0xff] %v326_v37 }
  0x38 PF: > { %s13_s16 = sadd.s32 1, %s610_s16   ;;  %s799_s12 = smov %s602_s14 }
  0x39   : > { %p10_p7 = scmp.ge.s32.totalorder %s13_s16, 30   ;;  %s800_s13 = smov %s606_s15 }
  0x3a   : > { %s801_s14 = smov %s804_s17  ;;  %s802_s15 = smov %s808_s18 }
  0x3b   :  { %12 = sbr.rel (!%p10_p7) target bundleno = 3 (0x3), region = 62 }

// kernel: conv3x3x3_forward.2
= control target key start
LH: loop header
LB: loop body
LE: loop exit
PB: predicated region body
PF: predicated region fallthrough
CT: control target
= control target key end

     0   :  { %s4190_s21 = smov 0   ;;  %s4192_s22 = smov 0   ;;  %s4942_s0 = inlined_call_operand.vmem [shape: bf16[2,16,256,12], index: 0, kind: input, shape index: {}]   ;;  %s4943_s1 = inlined_call_operand.vmem [shape: bf16[3,3,12,128], index: 1, kind: input, shape index: {}]   ;;  %s4944_s2 = inlined_call_operand.vmem [shape: f32[1,128], index: 2, kind: input, shape index: {}]   ;;  %s4945_s3 = inlined_call_operand.vmem [shape: f32[224,1], index: 3, kind: input, shape index: {}]   ;;  %s4946_s4 = inlined_call_operand.vmem [shape: bf16[2,14,224,128], index: 4, kind: output, shape index: {0}]   ;;  %s4947_s5 = inlined_call_operand.vmem [shape: f32[2,14,1,128], index: 5, kind: output, shape index: {1}]   ;;  %s4948_s6 = inlined_call_operand.vmem [shape: f32[2,14,1,128], index: 6, kind: output, shape index: {2}]  }
   0x1   :  { %s4194_s23 = smov 0   ;;  %s4196_s24 = smov 0  }
   0x2   :  { %s4198_s25 = smov 0  }
   0x3 LB: > { %s26_s26 = sadd.s32 1, %s4144_s23  ;;  %s29_s27 = sadd.s32 1, %s4148_s24  ;;  %s4152_s25 = sphi %s4198_s25, %s17_s25   ;;  %s4148_s24 = sphi %s4196_s24, %s4952_s24   ;;  %s4144_s23 = sphi %s4194_s23, %s4951_s23   ;;  %s4140_s22 = sphi %s4192_s22, %s4950_s22   ;;  %s4136_s21 = sphi %s4190_s21, %s4949_s21  }
   0x4   : > { %p27_p0 = scmp.ge.s32.totalorder %s26_s26, 14  ;;  %p3048_p1 = scmp.ge.s32.totalorder %s4152_s25, 1 }
   0x5   : > { %p235_p2 = scmp.lt.s32.totalorder %s4152_s25, 29 }
   0x6   : > { %s4954_s26 = smov (%p27_p0, %s26_s26), 0  ;;  %s4956_s27 = smov (!%p27_p0, %s29_s27), %s4148_s24 }
   0x7   : > { %p236_p3 = pnand %p3048_p1, %p235_p2  ;;  %p31_p4 = scmp.ge.s32.totalorder %s4956_s27, 2 }
   0x8   : > { %p283_p5 = scmp.lt.s32.totalorder (!%p236_p3), %s4140_s22, 1  ;;  %s3857_s16 = sshll.u32 (!%p236_p3), %s4136_s21, 7 }
   0x9   : > { %s4958_s27 = smov (%p31_p4, %s4956_s27), 0  ;;  %239 = sbr.rel (%p236_p3) target bundleno = 686 (0x2ae), region = 36 }
   0xa   : > { %p290_p6 = scmp.lt.s32.totalorder (!%p236_p3), %s4136_s21, 13 }
   0xe   : > { %v3114_v0 = vld [vmem:[%s4943_s1 + $0x8] sm:$0xf]  ;;  %v3874_v1 = vld [vmem:[%s4943_s1 + $0x8] sm:$0x30]  ;;  %vm468_vm0 = vcmask 1045504   ;;  %s4960_s22 = smov (!%p283_p5, %s4140_s22), 1 }
   0xf   : > { %v3115_v2 = vor.u32 %v3874_v1, %v3114_v0  ;;  %v3212_v3 = vld [vmem:[%s4943_s1 + $0x10] sm:$0xf]  ;;  %v3889_v4 = vld [vmem:[%s4943_s1 + $0x10] sm:$0x30]  ;;  %v3136_v6 = vld [vmem:[%s4943_s1] sm:$0xf] }
  0x10   : > { %v3213_v5 = vor.u32 %v3889_v4, %v3212_v3  ;;  %v3872_v7 = vld [vmem:[%s4943_s1] sm:$0x30]  ;;  %v3421_v10 = vld [vmem:[%s4943_s1 + $0x20] sm:$0xf]  ;;  %s3856_s28 = sshll.u32 %s4960_s22, 11  ;;  %vm425_vm1 = vcmask 97280  }
  0x11   : > { %v470_v8 = vsel %vm468_vm0, %v3115_v2, 0  ;;  %v3137_v9 = vor.u32 %v3872_v7, %v3136_v6  ;;  %v3919_v11 = vld [vmem:[%s4943_s1 + $0x20] sm:$0x30]  ;;  %s287_s7 = scalar_lea.vmem %s4942_s0, %s3856_s28  ;;  %v3317_v20 = vld [vmem:[%s4943_s1 + $0x18] sm:$0xf]  ;;  %s4962_s21 = smov (!%p290_p6, %s4136_s21), 13 }
  0x12   : > { %4063 = vmatpush.bf16.msra.mxu1 %v470_v8  ;;  %4064 = vmatpush.bf16.msra.mxu2 %v470_v8  ;;  %v795_v12 = vsel %vm468_vm0, %v3213_v5, 0  ;;  %v3422_v13 = vor.u32 %v3919_v11, %v3421_v10  ;;  %s4256_s8 = scalar_lea.vmem %s287_s7, %s3857_s16  ;;  %v3904_v21 = vld [vmem:[%s4943_s1 + $0x18] sm:$0x30]  ;;  %v3630_v32 = vld [vmem:[%s4943_s1 + $0x30] sm:$0xf]  ;;  %s4066_s11 = smul.u32 28, %s4962_s21 }
  0x13   : > { %479 = vmatpush.bf16.msra.mxu0 %v470_v8  ;;  %v565_v14 = vsel %vm468_vm0, %v3137_v9, 0  ;;  %4065 = vmatpush.bf16.msra.mxu3 %v470_v8  ;;  %v4260_v16 = vld [vmem:[%s4256_s8 + $0x28] sm:$0xff]  ;;  %v3318_v22 = vor.u32 %v3904_v21, %v3317_v20  ;;  %v4287_v24 = vld [vmem:[%s4256_s8 + $0x30] sm:$0xff]  ;;  %v4301_v28 = vld [vmem:[%s4256_s8 + $0x38] sm:$0xff]  ;;  %s4067_s14 = smul.u32 392, %s4960_s22 }
  0x14   : > { %v1315_v15 = vsel %vm468_vm0, %v3422_v13, 0  ;;  %v4263_v17 = vld [vmem:[%s4256_s8 + $0x48] sm:$0xff]  ;;  %v4290_v25 = vld [vmem:[%s4256_s8 + $0x50] sm:$0xff]  ;;  %v4304_v29 = vld [vmem:[%s4256_s8 + $0x58] sm:$0xff] }
  0x15   : > { %v4266_v18 = vld [vmem:[%s4256_s8 + $0x8] sm:$0xff]  ;;  %3120 = vmatmul.msk.bf16.vlgmr.msra.gmra.mxu1 %vm425_vm1, %v4260_v16  ;;  %3124 = vmatmul.msk.bf16.vlgmr.msra.gmra.mxu2 %vm425_vm1, %v4263_v17  ;;  %v1057_v23 = vsel %vm468_vm0, %v3318_v22, 0  ;;  %v3860_v26 = vld [vmem:[%s4256_s8 + $0x10] sm:$0xff]  ;;  %v3861_v30 = vld [vmem:[%s4256_s8 + $0x18] sm:$0xff]  ;;  %s294_s17 = sadd.s32 %s4067_s14, %s4066_s11 }
  0x16   : > { %804 = vmatpush.bf16.msrb.mxu2 %v795_v12  ;;  %574 = vmatpush.bf16.msrb.mxu1 %v565_v14  ;;  %v4273_v19 = vld [vmem:[%s4256_s8 + $0x68] sm:$0xff]  ;;  %v3873_v27 = vld [vmem:[%s4256_s8 + $0x70] sm:$0xff]  ;;  %v3890_v31 = vld [vmem:[%s4256_s8 + $0x80] sm:$0xff]  ;;  %s3051_s20 = sshll.u32 %s294_s17, 2 }
  0x17   : > { %1324 = vmatpush.bf16.msrb.mxu0 %v1315_v15  ;;  %3128 = vmatmul.msk.bf16.vlgmr.msra.gmra.mxu3 %vm425_vm1, %v4273_v19  ;;  %v3949_v33 = vld [vmem:[%s4943_s1 + $0x30] sm:$0x30]  ;;  %v3734_v35 = vld [vmem:[%s4943_s1 + $0x38] sm:$0xf]  ;;  %v3964_v36 = vld [vmem:[%s4943_s1 + $0x38] sm:$0x30]  ;;  %s4790_s30 = scalar_lea.vmem %s4946_s4, %s3051_s20 }
  0x18   : > { %3116 = vmatmul.msk.bf16.vlgmr.msra.gmra.mxu0 %vm425_vm1, %v4266_v18  ;;  %1066 = vmatpush.bf16.msrb.mxu3 %v1057_v23  ;;  %v3631_v34 = vor.u32 %v3949_v33, %v3630_v32  ;;  %v3525_v37 = vld [vmem:[%s4943_s1 + $0x28] sm:$0xf]  ;;  %v3735_v38 = vor.u32 %v3964_v36, %v3734_v35  ;;  %v3934_v39 = vld [vmem:[%s4943_s1 + $0x28] sm:$0x30]  ;;  %v3838_v40 = vld [vmem:[%s4943_s1 + $0x40] sm:$0xf] }
  0x19   : > { %v3526_v42 = vor.u32 %v3934_v39, %v3525_v37  ;;  %v3979_v43 = vld [vmem:[%s4943_s1 + $0x40] sm:$0x30]  ;;  %v3891_v51 = vld [vmem:[%s4256_s8 + $0x88] sm:$0xff]  ;;  %v3875_v53 = vld [vmem:[%s4256_s8 + $0x10] sm:$0xff] }
  0x1a   : > { %v1835_v41 = vsel %vm468_vm0, %v3631_v34, 0  ;;  %v2093_v44 = vsel %vm468_vm0, %v3735_v38, 0  ;;  %v3839_v45 = vor.u32 %v3979_v43, %v3838_v40  ;;  %v4343_v48 = vld [vmem:[%s4256_s8 + $0x40] sm:$0xff]  ;;  %v3905_v54 = vld [vmem:[%s4256_s8 + $0x88] sm:$0xff]  ;;  %v3892_v55 = vld [vmem:[%s4256_s8 + $0x90] sm:$0xff] }
  0x1b   : > { %1844 = vmatpush.bf16.msra.mxu2 %v1835_v41  ;;  %v1573_v46 = vsel %vm468_vm0, %v3526_v42, 0  ;;  %v4346_v49 = vld [vmem:[%s4256_s8 + $0x60] sm:$0xff]  ;;  %v3876_v56 = vld [vmem:[%s4256_s8 + $0x18] sm:$0xff]  ;;  %v3906_v57 = vld [vmem:[%s4256_s8 + $0x90] sm:$0xff] }
  0x1c   : > { %2102 = vmatpush.bf16.msra.mxu3 %v2093_v44  ;;  %1582 = vmatpush.bf16.msra.mxu1 %v1573_v46  ;;  %v2351_v47 = vsel %vm468_vm0, %v3839_v45, 0  ;;  %v3862_v50 = vld [vmem:[%s4256_s8 + $0x20] sm:$0xff]  ;;  %v3893_v58 = vld [vmem:[%s4256_s8 + $0x98] sm:$0xff]  ;;  %v3878_v62 = vld [vmem:[%s4256_s8 + $0x28] sm:$0xff] }
  0x1d   : > { %2360 = vmatpush.bf16.msra.mxu0 %v2351_v47  ;;  %v3858_v52 = vld [vmem:[%s4256_s8] sm:$0xff]  ;;  %v3907_v60 = vld [vmem:[%s4256_s8 + $0x98] sm:$0xff]  ;;  %v3895_v0 = vld [vmem:[%s4256_s8 + $0xa8] sm:$0xff] }
  0x1e   : > { %v3877_v59 = vld [vmem:[%s4256_s8 + $0x20] sm:$0xff]  ;;  %v3879_v1 = vld [vmem:[%s4256_s8 + $0x30] sm:$0xff]  ;;  %v3909_v3 = vld [vmem:[%s4256_s8 + $0xa8] sm:$0xff] }
  0x1f   : > { %v3894_v61 = vld [vmem:[%s4256_s8 + $0xa0] sm:$0xff]  ;;  %v3896_v5 = vld [vmem:[%s4256_s8 + $0xb0] sm:$0xff]  ;;  %v3880_v11 = vld [vmem:[%s4256_s8 + $0x38] sm:$0xff] }
  0x20   : > { %v3908_v63 = vld [vmem:[%s4256_s8 + $0xa0] sm:$0xff]  ;;  %v3910_v13 = vld [vmem:[%s4256_s8 + $0xb0] sm:$0xff]  ;;  %v3882_v39 = vld [vmem:[%s4256_s8 + $0x48] sm:$0xff] }
  0x21   : > { %v3898_v33 = vld [vmem:[%s4256_s8 + $0xc0] sm:$0xff]  ;;  %v3899_v43 = vld [vmem:[%s4256_s8 + $0xc8] sm:$0xff] }
  0x25   : > { %3121 = vmatmul.msk.bf16.gmra.mxu1 %vm425_vm1, %v4287_v24  ;;  %3125 = vmatmul.msk.bf16.gmra.mxu2 %vm425_vm1, %v4290_v25 }
  0x27   : > { %3129 = vmatmul.msk.bf16.gmra.mxu3 %vm425_vm1, %v3873_v27  ;;  %v3881_v27 = vld [vmem:[%s4256_s8 + $0x40] sm:$0xff] }
  0x28   : > { %3117 = vmatmul.msk.bf16.gmra.mxu0 %vm425_vm1, %v3860_v26 }
  0x35   : > { %3122 = vmatmul.msk.bf16.gmra.mxu1 %vm425_vm1, %v4301_v28  ;;  %3126 = vmatmul.msk.bf16.gmra.mxu2 %vm425_vm1, %v4304_v29 }
  0x37   : > { %3319 = vmatmul.msk.bf16.vlgmr.msrb.gmra.mxu3 %vm425_vm1, %v3890_v31 }
  0x38   : > { %3118 = vmatmul.msk.bf16.gmra.mxu0 %vm425_vm1, %v3861_v30 }
  0x45   : > { %3123 = vmatmul.msk.bf16.gmra.mxu1 %vm425_vm1, %v4343_v48  ;;  %3127 = vmatmul.msk.bf16.gmra.mxu2 %vm425_vm1, %v4346_v49 }
  0x47   : > { %3320 = vmatmul.msk.bf16.gmra.mxu3 %vm425_vm1, %v3891_v51  ;;  %v3883_v51 = vld [vmem:[%s4256_s8 + $0x50] sm:$0xff] }
  0x48   : > { %3119 = vmatmul.msk.bf16.gmra.mxu0 %vm425_vm1, %v3862_v50 }
  0x55   : > { %3138 = vmatmul.msk.bf16.vlgmr.msrb.gmra.mxu1 %vm425_vm1, %v3858_v52  ;;  %3214 = vmatmul.msk.bf16.vlgmr.msrb.gmra.mxu2 %vm425_vm1, %v3875_v53  ;;  %v3913_v53 = vld [vmem:[%s4256_s8 + $0xc8] sm:$0xff] }
  0x57   : > { %3321 = vmatmul.msk.bf16.gmra.mxu3 %vm425_vm1, %v3892_v55 }
  0x58   : > { %3423 = vmatmul.msk.bf16.vlgmr.msrb.gmra.mxu0 %vm425_vm1, %v3905_v54 }
  0x65   : > { %3139 = vmatmul.msk.bf16.gmra.mxu1 %vm425_vm1, %v4266_v18  ;;  %3215 = vmatmul.msk.bf16.gmra.mxu2 %vm425_vm1, %v3876_v56  ;;  %v3897_v18 = vld [vmem:[%s4256_s8 + $0xb8] sm:$0xff]  ;;  %v3900_v56 = vld [vmem:[%s4256_s8 + $0xd0] sm:$0xff] }
  0x67   : > { %3322 = vmatmul.msk.bf16.gmra.mxu3 %vm425_vm1, %v3893_v58 }
  0x68   : > { %3424 = vmatmul.msk.bf16.gmra.mxu0 %vm425_vm1, %v3906_v57 }
  0x75   : > { %3140 = vmatmul.msk.bf16.gmra.mxu1 %vm425_vm1, %v3860_v26  ;;  %3216 = vmatmul.msk.bf16.gmra.mxu2 %vm425_vm1, %v3877_v59 }
  0x77   : > { %3323 = vmatmul.msk.bf16.gmra.mxu3 %vm425_vm1, %v3894_v61 }
  0x78   : > { %3425 = vmatmul.msk.bf16.gmra.mxu0 %vm425_vm1, %v3907_v60 }
  0x85   : > { %3141 = vmatmul.msk.bf16.gmra.mxu1 %vm425_vm1, %v3861_v30  ;;  %3217 = vmatmul.msk.bf16.gmra.mxu2 %vm425_vm1, %v3878_v62 }
  0x87   : > { %3324 = vmatmul.msk.bf16.gmra.mxu3 %vm425_vm1, %v3895_v0 }
  0x88   : > { %3426 = vmatmul.msk.bf16.gmra.mxu0 %vm425_vm1, %v3908_v63 }
  0x92   : > { %v4387_v2 = vpop.f32.mrf.mxu1 }
  0x95   : > { %v481_v4 = vpop.f32.mrf.mxu0  ;;  %3142 = vmatmul.msk.bf16.gmra.mxu1 %vm425_vm1, %v3862_v50  ;;  %3218 = vmatmul.msk.bf16.gmra.mxu2 %vm425_vm1, %v3879_v1 }
  0x97   : > { %3325 = vmatmul.msk.bf16.gmra.mxu3 %vm425_vm1, %v3896_v5  ;;  %v3914_v5 = vld [vmem:[%s4256_s8 + $0xd0] sm:$0xff] }
  0x98   : > { %3427 = vmatmul.msk.bf16.gmra.mxu0 %vm425_vm1, %v3909_v3  ;;  %v4395_v6 = vpop.f32.mrf.mxu2  ;;  %v3884_v3 = vld [vmem:[%s4256_s8 + $0x58] sm:$0xff] }
  0x9a   : > { %v4397_v7 = vpop.f32.mrf.mxu1  ;;  %v4399_v8 = vpop.f32.mrf.mxu3 }
  0x9d   : > { %v4401_v9 = vpop.f32.mrf.mxu0 }
  0xa0   : > { %v4403_v10 = vpop.f32.mrf.mxu2 }
  0xa2   : > { %v4406_v12 = vpop.f32.mrf.mxu1  ;;  %v4409_v14 = vpop.f32.mrf.mxu3 }
  0xa5   : > { %v4411_v15 = vpop.f32.mrf.mxu0  ;;  %3143 = vmatmul.msk.bf16.gmra.mxu1 %vm425_vm1, %v4260_v16  ;;  %3219 = vmatmul.msk.bf16.gmra.mxu2 %vm425_vm1, %v3880_v11  ;;  %v3911_v16 = vld [vmem:[%s4256_s8 + $0xb8] sm:$0xff] }
  0xa7   : > { %3326 = vmatmul.msk.bf16.gmra.mxu3 %vm425_vm1, %v3897_v18 }
  0xa8   : > { %3428 = vmatmul.msk.bf16.gmra.mxu0 %vm425_vm1, %v3910_v13  ;;  %v4419_v20 = vpop.f32.mrf.mxu2 }
  0xaa   : > { %v4421_v21 = vpop.f32.mrf.mxu1  ;;  %v4423_v22 = vpop.f32.mrf.mxu3 }
  0xad   : > { %v4425_v23 = vpop.f32.mrf.mxu0 }
  0xb0   : > { %v4427_v26 = vpop.f32.mrf.mxu2 }
  0xb2   : > { %v4430_v30 = vpop.f32.mrf.mxu1  ;;  %v4433_v31 = vpop.f32.mrf.mxu3 }
  0xb5   : > { %v4435_v32 = vpop.f32.mrf.mxu0  ;;  %3144 = vmatmul.msk.bf16.gmra.mxu1 %vm425_vm1, %v4287_v24  ;;  %3220 = vmatmul.msk.bf16.gmra.mxu2 %vm425_vm1, %v3881_v27  ;;  %v3912_v24 = vld [vmem:[%s4256_s8 + $0xc0] sm:$0xff] }
  0xb7   : > { %3327 = vmatmul.msk.bf16.gmra.mxu3 %vm425_vm1, %v3898_v33 }
  0xb8   : > { %3429 = vmatmul.msk.bf16.gmra.mxu0 %vm425_vm1, %v3911_v16  ;;  %v4443_v34 = vpop.f32.mrf.mxu2  ;;  %v3901_v16 = vld [vmem:[%s4256_s8 + $0xd8] sm:$0xff] }
  0xba   : > { %v4445_v35 = vpop.f32.mrf.mxu1  ;;  %v1068_v36 = vpop.f32.mrf.mxu3 }
  0xbd   : > { %v4447_v37 = vpop.f32.mrf.mxu0 }
  0xc0   : > { %v4449_v38 = vpop.f32.mrf.mxu2 }
  0xc2   : > { %v4452_v40 = vpop.f32.mrf.mxu1  ;;  %v1070_v41 = vpop.f32.mrf.mxu3 }
  0xc5   : > { %v4455_v42 = vpop.f32.mrf.mxu0  ;;  %3145 = vmatmul.msk.bf16.gmra.mxu1 %vm425_vm1, %v4301_v28  ;;  %3221 = vmatmul.msk.bf16.gmra.mxu2 %vm425_vm1, %v3882_v39 }
  0xc7   : > { %3328 = vmatmul.msk.bf16.gmra.mxu3 %vm425_vm1, %v3899_v43 }
  0xc8   : > { %3430 = vmatmul.msk.bf16.gmra.mxu0 %vm425_vm1, %v3912_v24  ;;  %v4463_v44 = vpop.f32.mrf.mxu2 }
  0xca   : > { %v4465_v45 = vpop.f32.mrf.mxu1  ;;  %v1073_v46 = vpop.f32.mrf.mxu3 }
  0xcd   : > { %v4467_v47 = vpop.f32.mrf.mxu0 }
  0xd0   : > { %v4469_v50 = vpop.f32.mrf.mxu2 }
  0xd2   : > { %v576_v52 = vpop.f32.mrf.mxu1  ;;  %v1075_v54 = vpop.f32.mrf.mxu3 }
  0xd3   : > { %v577_v28 = vadd.f32 %v576_v52, %v481_v4 }
  0xd5   : > { %v1326_v55 = vpop.f32.mrf.mxu0  ;;  %3146 = vmatmul.msk.bf16.gmra.mxu1 %vm425_vm1, %v4343_v48  ;;  %3222 = vmatmul.msk.bf16.gmra.mxu2 %vm425_vm1, %v3883_v51 }
  0xd7   : > { %3329 = vmatmul.msk.bf16.gmra.mxu3 %vm425_vm1, %v3900_v56 }
  0xd8   : > { %3431 = vmatmul.msk.bf16.gmra.mxu0 %vm425_vm1, %v3913_v53  ;;  %v806_v57 = vpop.f32.mrf.mxu2  ;;  %v3885_v53 = vld [vmem:[%s4256_s8 + $0x60] sm:$0xff] }
  0xd9   : > { %v876_v58 = vadd.f32 %v806_v57, %v577_v28 }
  0xda   : > { %v578_v59 = vpop.f32.mrf.mxu1  ;;  %v1078_v60 = vpop.f32.mrf.mxu3 }
  0xdb   : > { %v1138_v61 = vadd.f32 %v1068_v36, %v876_v58  ;;  %v579_v62 = vadd.f32 %v578_v59, %v4401_v9 }
  0xdd   : > { %v1328_v63 = vpop.f32.mrf.mxu0  ;;  %v4480_v0 = vadd.f32 %v1326_v55, %v1138_v61  ;;  %v3915_v55 = vld [vmem:[%s4256_s8 + $0xd8] sm:$0xff]  ;;  %v3902_v61 = vld [vmem:[%s4256_s8 + $0xe0] sm:$0xff] }
  0xe0   : > { %v808_v1 = vpop.f32.mrf.mxu2 }
  0xe1   : > { %v877_v48 = vadd.f32 %v808_v1, %v579_v62 }
  0xe2   : > { %v581_v4 = vpop.f32.mrf.mxu1  ;;  %v1080_v11 = vpop.f32.mrf.mxu3 }
  0xe3   : > { %v1139_v13 = vadd.f32 %v1070_v41, %v877_v48  ;;  %v582_v18 = vadd.f32 %v581_v4, %v4411_v15 }
  0xe5   : > { %v1331_v27 = vpop.f32.mrf.mxu0  ;;  %3147 = vmatmul.msk.bf16.gmra.mxu1 %vm425_vm1, %v4263_v17  ;;  %3223 = vmatmul.msk.bf16.gmra.mxu2 %vm425_vm1, %v3884_v3  ;;  %v4489_v9 = vadd.f32 %v1328_v63, %v1139_v13 }
  0xe7   : > { %3330 = vmatmul.msk.bf16.gmra.mxu3 %vm425_vm1, %v3901_v16 }
  0xe8   : > { %3432 = vmatmul.msk.bf16.gmra.mxu0 %vm425_vm1, %v3914_v5  ;;  %v811_v33 = vpop.f32.mrf.mxu2  ;;  %v3886_v5 = vld [vmem:[%s4256_s8 + $0x68] sm:$0xff] }
  0xe9   : > { %v878_v36 = vadd.f32 %v811_v33, %v582_v18  ;;  %v3916_v18 = vld [vmem:[%s4256_s8 + $0xe0] sm:$0xff] }
  0xea   : > { %v583_v39 = vpop.f32.mrf.mxu1  ;;  %v1083_v15 = vpop.f32.mrf.mxu3 }
  0xeb   : > { %v1140_v24 = vadd.f32 %v1073_v46, %v878_v36  ;;  %v584_v41 = vadd.f32 %v583_v39, %v4425_v23  ;;  %v3903_v39 = vld [vmem:[%s4256_s8 + $0xe8] sm:$0xff] }
  0xed   : > { %v1333_v43 = vpop.f32.mrf.mxu0  ;;  %v4494_v51 = vadd.f32 %v1331_v27, %v1140_v24 }
  0xf0   : > { %v813_v17 = vpop.f32.mrf.mxu2 }
  0xf1   : > { %v879_v52 = vadd.f32 %v813_v17, %v584_v41 }
  0xf2   : > { %v586_v28 = vpop.f32.mrf.mxu1  ;;  %v1085_v56 = vpop.f32.mrf.mxu3 }
  0xf3   : > { %v1141_v57 = vadd.f32 %v1075_v54, %v879_v52  ;;  %v587_v58 = vadd.f32 %v586_v28, %v4435_v32  ;;  %v3887_v28 = vld [vmem:[%s4256_s8 + $0x70] sm:$0xff] }
  0xf5   : > { %v1336_v59 = vpop.f32.mrf.mxu0  ;;  %3148 = vmatmul.msk.bf16.gmra.mxu1 %vm425_vm1, %v4290_v25  ;;  %3224 = vmatmul.msk.bf16.gmra.mxu2 %vm425_vm1, %v3885_v53  ;;  %v4503_v23 = vadd.f32 %v1333_v43, %v1141_v57  ;;  %v3917_v57 = vld [vmem:[%s4256_s8 + $0xe8] sm:$0xff] }
  0xf7   : > { %3331 = vmatmul.msk.bf16.gmra.mxu3 %vm425_vm1, %v3902_v61 }
  0xf8   : > { %3433 = vmatmul.msk.bf16.gmra.mxu0 %vm425_vm1, %v3915_v55  ;;  %v816_v46 = vpop.f32.mrf.mxu2 }
  0xf9   : > { %v880_v62 = vadd.f32 %v816_v46, %v587_v58  ;;  %v3950_v46 = vld [vmem:[%s4256_s8 + $0x108] sm:$0xff] }
  0xfa   : > { %v588_v54 = vpop.f32.mrf.mxu1  ;;  %v1088_v32 = vpop.f32.mrf.mxu3 }
  0xfb   : > { %v1142_v63 = vadd.f32 %v1078_v60, %v880_v62  ;;  %v589_v1 = vadd.f32 %v588_v54, %v4447_v37 }
  0xfd   : > { %v1338_v48 = vpop.f32.mrf.mxu0  ;;  %v4508_v3 = vadd.f32 %v1336_v59, %v1142_v63 }
 0x100   : > { %v818_v25 = vpop.f32.mrf.mxu2 }
 0x101   : > { %v881_v4 = vadd.f32 %v818_v25, %v589_v1 }
 0x102   : > { %v591_v13 = vpop.f32.mrf.mxu1  ;;  %v1090_v27 = vpop.f32.mrf.mxu3 }
 0x103   : > { %v1143_v16 = vadd.f32 %v1080_v11, %v881_v4  ;;  %v592_v33 = vadd.f32 %v591_v13, %v4455_v42  ;;  %v3888_v13 = vld [vmem:[%s4256_s8 + $0x78] sm:$0xff] }
 0x105   : > { %v1341_v36 = vpop.f32.mrf.mxu0  ;;  %3149 = vmatmul.msk.bf16.gmra.mxu1 %vm425_vm1, %v4304_v29  ;;  %3225 = vmatmul.msk.bf16.gmra.mxu2 %vm425_vm1, %v3886_v5  ;;  %v4517_v37 = vadd.f32 %v1338_v48, %v1143_v16  ;;  %v3918_v16 = vld [vmem:[%s4256_s8 + $0xf0] sm:$0xff] }
 0x107   : > { %3332 = vmatmul.msk.bf16.gmra.mxu3 %vm425_vm1, %v3903_v39  ;;  %v3951_v39 = vld [vmem:[%s4256_s8 + $0x110] sm:$0xff] }
 0x108   : > { %3434 = vmatmul.msk.bf16.gmra.mxu0 %vm425_vm1, %v3916_v18  ;;  %v821_v60 = vpop.f32.mrf.mxu2 }
 0x109   : > { %v882_v11 = vadd.f32 %v821_v60, %v592_v33 }
 0x10a   : > { %v593_v24 = vpop.f32.mrf.mxu1  ;;  %v1093_v42 = vpop.f32.mrf.mxu3 }
 0x10b   : > { %v1144_v41 = vadd.f32 %v1083_v15, %v882_v11  ;;  %v594_v43 = vadd.f32 %v593_v24, %v4467_v47 }
 0x10d   : > { %v1343_v17 = vpop.f32.mrf.mxu0  ;;  %v4522_v52 = vadd.f32 %v1341_v36, %v1144_v41 }
 0x110   : > { %v823_v29 = vpop.f32.mrf.mxu2 }
 0x111   : > { %v883_v53 = vadd.f32 %v823_v29, %v594_v43 }
 0x112   : > { %v596_v55 = vpop.f32.mrf.mxu1  ;;  %v1095_v58 = vpop.f32.mrf.mxu3 }
 0x113   : > { %v1145_v59 = vadd.f32 %v1085_v56, %v883_v53  ;;  %v597_v47 = vadd.f32 %v596_v55, %v4387_v2  ;;  %v3920_v55 = vld [vmem:[%s4256_s8 + $0x90] sm:$0xff] }
 0x115   : > { %v1346_v61 = vpop.f32.mrf.mxu0  ;;  %3150 = vmatmul.msk.bf16.gmra.mxu1 %vm425_vm1, %v4346_v49  ;;  %3226 = vmatmul.msk.bf16.gmra.mxu2 %vm425_vm1, %v3887_v28  ;;  %v4530_v15 = vadd.f32 %v1343_v17, %v1145_v59  ;;  %v4154_v17 = vmov 0   ;;  %v3965_v59 = vld [vmem:[%s4256_s8 + $0x110] sm:$0xff] }
 0x116   : > { %4110 = vset.pattern.permute.xlu0 %v4154_v17  ;;  %4111 = vset.pattern.permute.xlu1 %v4154_v17 }
 0x117   : > { %3736 = vmatmul.msk.bf16.vlgmr.msra.gmra.mxu3 %vm425_vm1, %v3950_v46  ;;  %4112 = vset.pattern.permute.xlu2 %v4154_v17 }
 0x118   : > { %3435 = vmatmul.msk.bf16.gmra.mxu0 %vm425_vm1, %v3917_v57  ;;  %v826_v62 = vpop.f32.mrf.mxu2  ;;  %v3935_v57 = vld [vmem:[%s4256_s8 + $0x100] sm:$0xff] }
 0x119   : > { %v884_v56 = vadd.f32 %v826_v62, %v597_v47  ;;  %v3952_v62 = vld [vmem:[%s4256_s8 + $0x118] sm:$0xff] }
 0x11a   : > { %v598_v54 = vpop.f32.mrf.mxu1  ;;  %v1098_v63 = vpop.f32.mrf.mxu3 }
 0x11b   : > { %v1146_v1 = vadd.f32 %v1088_v32, %v884_v56  ;;  %v599_v25 = vadd.f32 %v598_v54, %v4397_v7 }
 0x11d   : > { %v1348_v48 = vpop.f32.mrf.mxu0  ;;  %v4535_v49 = vadd.f32 %v1346_v61, %v1146_v1 }
 0x120   : > { %v828_v4 = vpop.f32.mrf.mxu2 }
 0x121   : > { %v885_v5 = vadd.f32 %v828_v4, %v599_v25 }
 0x122   : > { %v601_v18 = vpop.f32.mrf.mxu1  ;;  %v1100_v33 = vpop.f32.mrf.mxu3 }
 0x123   : > { %v1147_v2 = vadd.f32 %v1090_v27, %v885_v5  ;;  %v602_v7 = vadd.f32 %v601_v18, %v4406_v12 }
 0x125   : > { %v1351_v36 = vpop.f32.mrf.mxu0  ;;  %3151 = vmatmul.msk.bf16.gmra.mxu1 %vm425_vm1, %v4273_v19  ;;  %3227 = vmatmul.msk.bf16.gmra.mxu2 %vm425_vm1, %v3888_v13  ;;  %v4544_v32 = vadd.f32 %v1348_v48, %v1147_v2  ;;  %v2520_v19 = vld [vmem:[%s4945_s3] sm:$0xff]  ;;  %v2522_v13 = vld [vmem:[%s4945_s3 + $0x10] sm:$0xff] }
 0x126   : > { %2550 = vperm.xlu0 %4110, %v2520_v19   ;;  %2560 = vperm.xlu1 %4111, %v2522_v13  }
 0x127   : > { %3737 = vmatmul.msk.bf16.gmra.mxu3 %vm425_vm1, %v3951_v39  ;;  %v3936_v39 = vld [vmem:[%s4256_s8 + $0x108] sm:$0xff] }
 0x128   : > { %3436 = vmatmul.msk.bf16.gmra.mxu0 %vm425_vm1, %v3918_v16  ;;  %v831_v60 = vpop.f32.mrf.mxu2 }
 0x129   : > { %v886_v11 = vadd.f32 %v831_v60, %v602_v7  ;;  %v3966_v60 = vld [vmem:[%s4256_s8 + $0x118] sm:$0xff] }
 0x12a   : > { %v603_v27 = vpop.f32.mrf.mxu1  ;;  %v1103_v24 = vpop.f32.mrf.mxu3 }
 0x12b   : > { %v1148_v41 = vadd.f32 %v1093_v42, %v886_v11  ;;  %v604_v29 = vadd.f32 %v603_v27, %v4421_v21  ;;  %v2521_v21 = vld [vmem:[%s4945_s3 + $0x8] sm:$0xff] }
 0x12d   : > { %v1353_v43 = vpop.f32.mrf.mxu0  ;;  %v4552_v12 = vadd.f32 %v1351_v36, %v1148_v41  ;;  %v3921_v36 = vld [vmem:[%s4256_s8 + $0x98] sm:$0xff] }
 0x12e   : > { %2555 = vperm.xlu0 %4110, %v2521_v21   ;;  %v3967_v21 = vld [vmem:[%s4256_s8 + $0x120] sm:$0xff] }
 0x130   : > { %v833_v53 = vpop.f32.mrf.mxu2 }
 0x131   : > { %v887_v28 = vadd.f32 %v833_v53, %v604_v29 }
 0x132   : > { %v606_v42 = vpop.f32.mrf.mxu1  ;;  %v1105_v61 = vpop.f32.mrf.mxu3 }
 0x133   : > { %v1149_v46 = vadd.f32 %v1095_v58, %v887_v28  ;;  %v607_v54 = vadd.f32 %v606_v42, %v4430_v30 }
 0x135   : > { %v1356_v47 = vpop.f32.mrf.mxu0  ;;  %3527 = vmatmul.msk.bf16.vlgmr.msra.gmra.mxu1 %vm425_vm1, %v3920_v55  ;;  %3632 = vmatmul.msk.bf16.vlgmr.msra.gmra.mxu2 %vm425_vm1, %v3935_v57  ;;  %v4561_v56 = vadd.f32 %v1353_v43, %v1149_v46 }
 0x137   : > { %3738 = vmatmul.msk.bf16.gmra.mxu3 %vm425_vm1, %v3952_v62  ;;  %v3937_v62 = vld [vmem:[%s4256_s8 + $0x110] sm:$0xff] }
 0x138   : > { %3840 = vmatmul.msk.bf16.vlgmr.msra.gmra.mxu0 %vm425_vm1, %v3965_v59  ;;  %v836_v58 = vpop.f32.mrf.mxu2 }
 0x139   : > { %v888_v1 = vadd.f32 %v836_v58, %v607_v54 }
 0x13a   : > { %v608_v48 = vpop.f32.mrf.mxu1  ;;  %v1108_v25 = vpop.f32.mrf.mxu3 }
 0x13b   : > { %v1150_v4 = vadd.f32 %v1098_v63, %v888_v1  ;;  %v609_v30 = vadd.f32 %v608_v48, %v4445_v35  ;;  %v3953_v63 = vld [vmem:[%s4256_s8 + $0x120] sm:$0xff]  ;;  %v2523_v35 = vld [vmem:[%s4945_s3 + $0x18] sm:$0xff]  ;;  %v3954_v48 = vld [vmem:[%s4256_s8 + $0x128] sm:$0xff] }
 0x13c   : > { %2565 = vperm.xlu1 %4111, %v2523_v35  }
 0x13d   : > { %v1358_v5 = vpop.f32.mrf.mxu0  ;;  %v4572_v18 = vadd.f32 %v1356_v47, %v1150_v4  ;;  %v3922_v47 = vld [vmem:[%s4256_s8 + $0xa0] sm:$0xff] }
 0x140   : > { %v838_v16 = vpop.f32.mrf.mxu2 }
 0x141   : > { %v889_v2 = vadd.f32 %v838_v16, %v609_v30 }
 0x142   : > { %v611_v7 = vpop.f32.mrf.mxu1  ;;  %v1110_v11 = vpop.f32.mrf.mxu3 }
 0x143   : > { %v1151_v27 = vadd.f32 %v1100_v33, %v889_v2  ;;  %v612_v19 = vadd.f32 %v611_v7, %v4452_v40  ;;  %v2526_v2 = vld [vmem:[%s4945_s3 + $0x30] sm:$0xff] }
 0x144   : > { %2580 = vperm.xlu0 %4110, %v2526_v2  }
 0x145   : > { %v1361_v41 = vpop.f32.mrf.mxu0  ;;  %3528 = vmatmul.msk.bf16.gmra.mxu1 %vm425_vm1, %v3921_v36  ;;  %3633 = vmatmul.msk.bf16.gmra.mxu2 %vm425_vm1, %v3936_v39  ;;  %v4581_v43 = vadd.f32 %v1358_v5, %v1151_v27  ;;  %v3938_v27 = vld [vmem:[%s4256_s8 + $0x118] sm:$0xff] }
 0x147   : > { %3739 = vmatmul.msk.bf16.gmra.mxu3 %vm425_vm1, %v3953_v63  ;;  %v3968_v63 = vld [vmem:[%s4256_s8 + $0x128] sm:$0xff] }
 0x148   : > { %3841 = vmatmul.msk.bf16.gmra.mxu0 %vm425_vm1, %v3966_v60  ;;  %v841_v33 = vpop.f32.mrf.mxu2  ;;  %v3923_v60 = vld [vmem:[%s4256_s8 + $0xa8] sm:$0xff] }
 0x149   : > { %v890_v17 = vadd.f32 %v841_v33, %v612_v19 }
 0x14a   : > { %v613_v29 = vpop.f32.mrf.mxu1  ;;  %v1113_v53 = vpop.f32.mrf.mxu3 }
 0x14b   : > { %v1152_v28 = vadd.f32 %v1103_v24, %v890_v17  ;;  %v614_v42 = vadd.f32 %v613_v29, %v4465_v45  ;;  %v2527_v29 = vld [vmem:[%s4945_s3 + $0x38] sm:$0xff] }
 0x14c   : > { %2585 = vperm.xlu1 %4111, %v2527_v29  }
 0x14d   : > { %v1363_v55 = vpop.f32.mrf.mxu0  ;;  %v4589_v57 = vadd.f32 %v1361_v41, %v1152_v28 }
 0x150   : > { %v843_v59 = vpop.f32.mrf.mxu2 }
 0x151   : > { %v891_v46 = vadd.f32 %v843_v59, %v614_v42 }
 0x152   : > { %v616_v40 = vpop.f32.mrf.mxu1  ;;  %v1115_v54 = vpop.f32.mrf.mxu3 }
 0x153   : > { %v1153_v58 = vadd.f32 %v1105_v61, %v891_v46  ;;  %v617_v45 = vadd.f32 %v616_v40, %v4395_v6 }
 0x155   : > { %v1366_v1 = vpop.f32.mrf.mxu0  ;;  %3529 = vmatmul.msk.bf16.gmra.mxu1 %vm425_vm1, %v3922_v47  ;;  %3634 = vmatmul.msk.bf16.gmra.mxu2 %vm425_vm1, %v3937_v62  ;;  %v4598_v24 = vadd.f32 %v1363_v55, %v1153_v58  ;;  %v2525_v62 = vld [vmem:[%s4945_s3 + $0x28] sm:$0xff] }
 0x157   : > { %3740 = vmatmul.msk.bf16.gmra.mxu3 %vm425_vm1, %v3954_v48  ;;  %v3939_v48 = vld [vmem:[%s4256_s8 + $0x120] sm:$0xff] }
 0x158   : > { %3842 = vmatmul.msk.bf16.gmra.mxu0 %vm425_vm1, %v3967_v21  ;;  %v846_v4 = vpop.f32.mrf.mxu2 }
 0x159   : > { %v892_v5 = vadd.f32 %v846_v4, %v617_v45  ;;  %v3969_v4 = vld [vmem:[%s4256_s8 + $0x130] sm:$0xff] }
 0x15a   : > { %v618_v61 = vpop.f32.mrf.mxu1  ;;  %v1118_v13 = vpop.f32.mrf.mxu3 }
 0x15b   : > { %v1154_v30 = vadd.f32 %v1108_v25, %v892_v5  ;;  %v619_v39 = vadd.f32 %v618_v61, %v4403_v10  ;;  %v3955_v25 = vld [vmem:[%s4256_s8 + $0x130] sm:$0xff]  ;;  %v2524_v10 = vld [vmem:[%s4945_s3 + $0x20] sm:$0xff] }
 0x15c   : > { %2570 = vperm.xlu2 %4112, %v2524_v10   ;;  %v3940_v10 = vld [vmem:[%s4256_s8 + $0x128] sm:$0xff] }
 0x15d   : > { %v1368_v16 = vpop.f32.mrf.mxu0  ;;  %v4606_v36 = vadd.f32 %v1366_v1, %v1154_v30  ;;  %v3924_v1 = vld [vmem:[%s4256_s8 + $0xb0] sm:$0xff] }
 0x160   : > { %v848_v6 = vpop.f32.mrf.mxu2 }
 0x161   : > { %v893_v7 = vadd.f32 %v848_v6, %v619_v39 }
 0x162   : > { %v621_v41 = vpop.f32.mrf.mxu1  ;;  %v1120_v35 = vpop.f32.mrf.mxu3 }
 0x163   : > { %v1155_v19 = vadd.f32 %v1110_v11, %v893_v7  ;;  %v622_v11 = vadd.f32 %v621_v41, %v4419_v20  ;;  %v2530_v41 = vld [vmem:[%s4945_s3 + $0x50] sm:$0xff] }
 0x164   : > { %2575 = vperm.xlu2 %4112, %v2525_v62   ;;  %2600 = vperm.xlu1 %4111, %v2530_v41  }
 0x165   : > { %v1371_v33 = vpop.f32.mrf.mxu0  ;;  %3530 = vmatmul.msk.bf16.gmra.mxu1 %vm425_vm1, %v3923_v60  ;;  %3635 = vmatmul.msk.bf16.gmra.mxu2 %vm425_vm1, %v3938_v27  ;;  %v4615_v17 = vadd.f32 %v1368_v16, %v1155_v19 }
 0x167   : > { %3741 = vmatmul.msk.bf16.gmra.mxu3 %vm425_vm1, %v3955_v25  ;;  %v3925_v25 = vld [vmem:[%s4256_s8 + $0xb8] sm:$0xff] }
 0x168   : > { %3843 = vmatmul.msk.bf16.gmra.mxu0 %vm425_vm1, %v3968_v63  ;;  %v851_v28 = vpop.f32.mrf.mxu2 }
 0x169   : > { %v894_v55 = vadd.f32 %v851_v28, %v622_v11  ;;  %v3970_v11 = vld [vmem:[%s4256_s8 + $0x138] sm:$0xff] }
 0x16a   : > { %v623_v42 = vpop.f32.mrf.mxu1  ;;  %v1123_v59 = vpop.f32.mrf.mxu3 }
 0x16b   : > { %v1156_v46 = vadd.f32 %v1113_v53, %v894_v55  ;;  %v624_v20 = vadd.f32 %v623_v42, %v4427_v26  ;;  %v3956_v53 = vld [vmem:[%s4256_s8 + $0x138] sm:$0xff]  ;;  %v2529_v26 = vld [vmem:[%s4945_s3 + $0x48] sm:$0xff] }
 0x16c   : > { %2595 = vperm.xlu0 %4110, %v2529_v26  }
 0x16d   : > { %v1373_v47 = vpop.f32.mrf.mxu0  ;;  %v4629_v40 = vadd.f32 %v1371_v33, %v1156_v46 }
 0x170   : > { %v853_v21 = vpop.f32.mrf.mxu2 }
 0x171   : > { %v895_v58 = vadd.f32 %v853_v21, %v624_v20 }
 0x172   : > { %v626_v45 = vpop.f32.mrf.mxu1  ;;  %v1125_v5 = vpop.f32.mrf.mxu3 }
 0x173   : > { %v1157_v61 = vadd.f32 %v1115_v54, %v895_v58  ;;  %v627_v2 = vadd.f32 %v626_v45, %v4443_v34 }
 0x175   : > { %v1376_v30 = vpop.f32.mrf.mxu0  ;;  %3531 = vmatmul.msk.bf16.gmra.mxu1 %vm425_vm1, %v3924_v1  ;;  %3636 = vmatmul.msk.bf16.gmra.mxu2 %vm425_vm1, %v3939_v48  ;;  %v4638_v16 = vadd.f32 %v1373_v47, %v1157_v61  ;;  %v2532_v48 = vld [vmem:[%s4945_s3 + $0x60] sm:$0xff] }
 0x176   : > { %2610 = vperm.xlu0 %4110, %v2532_v48  }
 0x177   : > { %3742 = vmatmul.msk.bf16.gmra.mxu3 %vm425_vm1, %v3956_v53  ;;  %v3941_v53 = vld [vmem:[%s4256_s8 + $0x130] sm:$0xff] }
 0x178   : > { %3844 = vmatmul.msk.bf16.gmra.mxu0 %vm425_vm1, %v3969_v4  ;;  %v856_v54 = vpop.f32.mrf.mxu2 }
 0x179   : > { %v896_v39 = vadd.f32 %v856_v54, %v627_v2  ;;  %v3971_v2 = vld [vmem:[%s4256_s8 + $0x140] sm:$0xff] }
 0x17a   : > { %v628_v6 = vpop.f32.mrf.mxu1  ;;  %v1128_v7 = vpop.f32.mrf.mxu3 }
 0x17b   : > { %v1158_v60 = vadd.f32 %v1118_v13, %v896_v39  ;;  %v629_v34 = vadd.f32 %v628_v6, %v4449_v38  ;;  %v3957_v13 = vld [vmem:[%s4256_s8 + $0x140] sm:$0xff] }
 0x17c   : > { %v2528_v38 = vld [vmem:[%s4945_s3 + $0x40] sm:$0xff] }
 0x17d   : > { %v1378_v27 = vpop.f32.mrf.mxu0  ;;  %v4649_v63 = vadd.f32 %v1376_v30, %v1158_v60  ;;  %2590 = vperm.xlu2 %4112, %v2528_v38   ;;  %v3926_v30 = vld [vmem:[%s4256_s8 + $0xc0] sm:$0xff] }
 0x180   : > { %v858_v19 = vpop.f32.mrf.mxu2 }
 0x181   : > { %v897_v33 = vadd.f32 %v858_v19, %v629_v34 }
 0x182   : > { %v631_v29 = vpop.f32.mrf.mxu1  ;;  %v1130_v28 = vpop.f32.mrf.mxu3 }
 0x183   : > { %v1159_v55 = vadd.f32 %v1120_v35, %v897_v33  ;;  %v632_v47 = vadd.f32 %v631_v29, %v4463_v44 }
 0x185   : > { %v1381_v42 = vpop.f32.mrf.mxu0  ;;  %3532 = vmatmul.msk.bf16.gmra.mxu1 %vm425_vm1, %v3925_v25  ;;  %3637 = vmatmul.msk.bf16.gmra.mxu2 %vm425_vm1, %v3940_v10  ;;  %v4658_v46 = vadd.f32 %v1378_v27, %v1159_v55  ;;  %v2531_v10 = vld [vmem:[%s4945_s3 + $0x58] sm:$0xff] }
 0x186   : > { %2605 = vperm.xlu2 %4112, %v2531_v10  }
 0x187   : > { %3743 = vmatmul.msk.bf16.gmra.mxu3 %vm425_vm1, %v3957_v13  ;;  %v3927_v13 = vld [vmem:[%s4256_s8 + $0xc8] sm:$0xff] }
 0x188   : > { %3845 = vmatmul.msk.bf16.gmra.mxu0 %vm425_vm1, %v3970_v11  ;;  %v861_v35 = vpop.f32.mrf.mxu2 }
 0x189   : > { %v898_v62 = vadd.f32 %v861_v35, %v632_v47  ;;  %v3972_v47 = vld [vmem:[%s4256_s8 + $0x148] sm:$0xff] }
 0x18a   : > { %v633_v20 = vpop.f32.mrf.mxu1  ;;  %v1133_v21 = vpop.f32.mrf.mxu3 }
 0x18b   : > { %v1160_v58 = vadd.f32 %v1123_v59, %v898_v62  ;;  %v634_v44 = vadd.f32 %v633_v20, %v4469_v50  ;;  %v3958_v59 = vld [vmem:[%s4256_s8 + $0x148] sm:$0xff] }
 0x18c   : > { %v2533_v50 = vld [vmem:[%s4945_s3 + $0x68] sm:$0xff] }
 0x18d   : > { %v1383_v1 = vpop.f32.mrf.mxu0  ;;  %v4669_v45 = vadd.f32 %v1381_v42, %v1160_v58  ;;  %2615 = vperm.xlu1 %4111, %v2533_v50   ;;  %v3959_v58 = vld [vmem:[%s4256_s8 + $0x150] sm:$0xff]  ;;  %v3943_v50 = vld [vmem:[%s4256_s8 + $0x140] sm:$0xff] }
 0x190   : > { %v863_v4 = vpop.f32.mrf.mxu2 }
 0x191   : > { %v899_v61 = vadd.f32 %v863_v4, %v634_v44 }
 0x192   : > { %v636_v26 = vpop.f32.mrf.mxu1  ;;  %v1135_v54 = vpop.f32.mrf.mxu3 }
 0x193   : > { %v1161_v39 = vadd.f32 %v1125_v5, %v899_v61  ;;  %v637_v27 = vadd.f32 %v636_v26, %v4399_v8  ;;  %v2535_v8 = vld [vmem:[%s4945_s3 + $0x78] sm:$0xff]  ;;  %v2536_v26 = vld [vmem:[%s4945_s3 + $0x80] sm:$0xff] }
 0x194   : > { %2625 = vperm.xlu0 %4110, %v2535_v8  }
 0x195   : > { %v1386_v6 = vpop.f32.mrf.mxu0  ;;  %3533 = vmatmul.msk.bf16.gmra.mxu1 %vm425_vm1, %v3926_v30  ;;  %3638 = vmatmul.msk.bf16.gmra.mxu2 %vm425_vm1, %v3941_v53  ;;  %v4678_v60 = vadd.f32 %v1383_v1, %v1161_v39  ;;  %v2541_v39 = vld [vmem:[%s4945_s3 + $0xa8] sm:$0xff] }
 0x196   : > { %2630 = vperm.xlu1 %4111, %v2536_v26   ;;  %v3974_v26 = vld [vmem:[%s4256_s8 + $0x158] sm:$0xff] }
 0x197   : > { %3744 = vmatmul.msk.bf16.gmra.mxu3 %vm425_vm1, %v3958_v59 }
 0x198   : > { %3846 = vmatmul.msk.bf16.gmra.mxu0 %vm425_vm1, %v3971_v2  ;;  %v866_v5 = vpop.f32.mrf.mxu2 }
 0x199   : > { %v900_v41 = vadd.f32 %v866_v5, %v637_v27  ;;  %v3973_v5 = vld [vmem:[%s4256_s8 + $0x150] sm:$0xff] }
 0x19a   : > { %v638_v34 = vpop.f32.mrf.mxu1  ;;  %v4686_v19 = vpop.f32.mrf.mxu3 }
 0x19b   : > { %v1162_v33 = vadd.f32 %v1128_v7, %v900_v41  ;;  %v639_v11 = vadd.f32 %v638_v34, %v4409_v14  ;;  %v3942_v7 = vld [vmem:[%s4256_s8 + $0x138] sm:$0xff]  ;;  %v2538_v14 = vld [vmem:[%s4945_s3 + $0x90] sm:$0xff] }
 0x19c   : > { %2640 = vperm.xlu0 %4110, %v2538_v14   ;;  %v2547_v14 = vld [vmem:[%s4945_s3 + $0xd8] sm:$0xff] }
 0x19d   : > { %v1388_v25 = vpop.f32.mrf.mxu0  ;;  %v4694_v29 = vadd.f32 %v1386_v6, %v1162_v33 }
 0x1a0   : > { %v868_v55 = vpop.f32.mrf.mxu2 }
 0x1a1   : > { %v901_v42 = vadd.f32 %v868_v55, %v639_v11  ;;  %v2544_v11 = vld [vmem:[%s4945_s3 + $0xc0] sm:$0xff] }
 0x1a2   : > { %v641_v38 = vpop.f32.mrf.mxu1  ;;  %v4700_v35 = vpop.f32.mrf.mxu3 }
 0x1a3   : > { %v1163_v62 = vadd.f32 %v1130_v28, %v901_v42  ;;  %v642_v48 = vadd.f32 %v641_v38, %v4423_v22 }
 0x1a4   : > { %2655 = vperm.xlu0 %4110, %v2541_v39  }
 0x1a5   : > { %v1391_v20 = vpop.f32.mrf.mxu0  ;;  %3534 = vmatmul.msk.bf16.gmra.mxu1 %vm425_vm1, %v3927_v13  ;;  %3639 = vmatmul.msk.bf16.gmra.mxu2 %vm425_vm1, %v3942_v7  ;;  %v4705_v1 = vadd.f32 %v1388_v25, %v1163_v62  ;;  %v3960_v25 = vld [vmem:[%s4256_s8 + $0x158] sm:$0xff] }
 0x1a7   : > { %3745 = vmatmul.msk.bf16.gmra.mxu3 %vm425_vm1, %v3959_v58  ;;  %v2551_v58 = vpop.permute.xlu0 %2550 }
 0x1a8   : > { %3847 = vmatmul.msk.bf16.gmra.mxu0 %vm425_vm1, %v3972_v47  ;;  %v871_v28 = vpop.f32.mrf.mxu2  ;;  %v2542_v47 = vld [vmem:[%s4945_s3 + $0xb0] sm:$0xff] }
 0x1a9   : > { %v902_v44 = vadd.f32 %v871_v28, %v642_v48 }
 0x1aa   : > { %v643_v4 = vpop.f32.mrf.mxu1  ;;  %v4713_v61 = vpop.f32.mrf.mxu3 }
 0x1ab   : > { %v1164_v30 = vadd.f32 %v1133_v21, %v902_v44  ;;  %v644_v2 = vadd.f32 %v643_v4, %v4433_v31  ;;  %v3928_v21 = vld [vmem:[%s4256_s8 + $0xd0] sm:$0xff]  ;;  %v2539_v31 = vld [vmem:[%s4945_s3 + $0x98] sm:$0xff] }
 0x1ac   : > { %2645 = vperm.xlu1 %4111, %v2539_v31   ;;  %2670 = vperm.xlu0 %4110, %v2544_v11   ;;  %v3929_v4 = vld [vmem:[%s4256_s8 + $0xd8] sm:$0xff] }
 0x1ad   : > { %v1393_v53 = vpop.f32.mrf.mxu0  ;;  %v4718_v22 = vadd.f32 %v1391_v20, %v1164_v30  ;;  %v4759_v20 = vld [vmem:[%s4944_s2] ss:$0 sm:$0xff]  ;;  %v3944_v30 = vld [vmem:[%s4256_s8 + $0x148] sm:$0xff] }
 0x1b0   : > { %v873_v6 = vpop.f32.mrf.mxu2 }
 0x1b1   : > { %v903_v59 = vadd.f32 %v873_v6, %v644_v2  ;;  %v3961_v6 = vld [vmem:[%s4256_s8 + $0x160] sm:$0xff] }
 0x1b2   : > { %v1584_v27 = vpop.f32.mrf.mxu1  ;;  %v4727_v41 = vpop.f32.mrf.mxu3 }
 0x1b3   : > { %v1165_v34 = vadd.f32 %v1135_v54, %v903_v59  ;;  %v1654_v8 = vadd.f32 %v1584_v27, %v4480_v0  ;;  %v2534_v54 = vld [vmem:[%s4945_s3 + $0x70] sm:$0xff]  ;;  %v2545_v59 = vld [vmem:[%s4945_s3 + $0xc8] sm:$0xff] }
 0x1b4   : > { %2620 = vperm.xlu2 %4112, %v2534_v54   ;;  %2660 = vperm.xlu1 %4111, %v2542_v47   ;;  %v2537_v27 = vld [vmem:[%s4945_s3 + $0x88] sm:$0xff] }
 0x1b5   : > { %v2362_v33 = vpop.f32.mrf.mxu0  ;;  %3535 = vmatmul.msk.bf16.gmra.mxu1 %vm425_vm1, %v3928_v21  ;;  %3640 = vmatmul.msk.bf16.gmra.mxu2 %vm425_vm1, %v3943_v50  ;;  %v4735_v10 = vadd.f32 %v1393_v53, %v1165_v34 }
 0x1b6   : > { %2685 = vperm.xlu0 %4110, %v2547_v14  }
 0x1b7   : > { %3746 = vmatmul.msk.bf16.gmra.mxu3 %vm425_vm1, %v3960_v25 }
 0x1b8   : > { %3848 = vmatmul.msk.bf16.gmra.mxu0 %vm425_vm1, %v3973_v5  ;;  %v1846_v55 = vpop.f32.mrf.mxu2 }
 0x1b9   : > { %v1916_v42 = vadd.f32 %v1846_v55, %v1654_v8 }
 0x1ba   : > { %v1586_v13 = vpop.f32.mrf.mxu1  ;;  %v4747_v7 = vpop.f32.mrf.mxu3 }
 0x1bb   : > { %v2174_v0 = vadd.f32 %v4686_v19, %v1916_v42  ;;  %v1655_v19 = vadd.f32 %v1586_v13, %v4489_v9 }
 0x1bc   : > { %2675 = vperm.xlu1 %4111, %v2545_v59   ;;  %2635 = vperm.xlu2 %4112, %v2537_v27  }
 0x1bd   : > { %v2364_v38 = vpop.f32.mrf.mxu0  ;;  %v2432_v62 = vadd.f32 %v2362_v33, %v2174_v0  ;;  %v2556_v33 = vpop.permute.xlu0 %2555 }
 0x1bf   : > { %v2464_v44 = vadd.f32 %v4759_v20, %v2432_v62 }
 0x1c0   : > { %v1848_v48 = vpop.f32.mrf.mxu2 }
 0x1c1   : > { %v1917_v28 = vadd.f32 %v1848_v48, %v1655_v19  ;;  %v2492_v50 = vmax.f32 %v2464_v44, 0.0  ;;  %v2561_v19 = vpop.permute.xlu1 %2560 }
 0x1c2   : > { %v1589_v53 = vpop.f32.mrf.mxu1  ;;  %v4771_v2 = vpop.f32.mrf.mxu3 }
 0x1c3   : > { %v2175_v39 = vadd.f32 %v4700_v35, %v1917_v28  ;;  %v1656_v35 = vadd.f32 %v1589_v53, %v4494_v51  ;;  %v2688_v25 = vmul.f32 %v2551_v58, %v2492_v50  ;;  %v2540_v58 = vld [vmem:[%s4945_s3 + $0xa0] sm:$0xff]  ;;  %v3945_v53 = vld [vmem:[%s4256_s8 + $0x150] sm:$0xff] }
 0x1c4   : > { %2650 = vperm.xlu2 %4112, %v2540_v58   ;;  %v2546_v58 = vld [vmem:[%s4945_s3 + $0xd0] sm:$0xff] }
 0x1c5   : > { %v2367_v9 = vpop.f32.mrf.mxu0  ;;  %v2433_v21 = vadd.f32 %v2364_v38, %v2175_v39  ;;  %3536 = vmatmul.msk.bf16.gmra.mxu1 %vm425_vm1, %v3929_v4  ;;  %3641 = vmatmul.msk.bf16.gmra.mxu2 %vm425_vm1, %v3944_v30  ;;  %v2750_v0 = vmul.f32 %v2688_v25, %v2492_v50  ;;  %v3930_v30 = vld [vmem:[%s4256_s8 + $0xe0] sm:$0xff] }
 0x1c6   : > { %v3975_v39 = vld [vmem:[%s4256_s8 + $0x160] sm:$0xff] }
 0x1c7   : > { %v2465_v5 = vadd.f32 %v4759_v20, %v2433_v21  ;;  %3747 = vmatmul.msk.bf16.gmra.mxu3 %vm425_vm1, %v3961_v6 }
 0x1c8   : > { %3849 = vmatmul.msk.bf16.gmra.mxu0 %vm425_vm1, %v3974_v26  ;;  %v1851_v34 = vpop.f32.mrf.mxu2 }
 0x1c9   : > { %v1918_v31 = vadd.f32 %v1851_v34, %v1656_v35  ;;  %v2493_v8 = vmax.f32 %v2465_v5, 0.0 }
 0x1ca   : > { %v1591_v54 = vpop.f32.mrf.mxu1  ;;  %v4792_v11 = vpop.f32.mrf.mxu3 }
 0x1cb   : > { %v2176_v51 = vadd.f32 %v4713_v61, %v1918_v31  ;;  %v2689_v55 = vmul.f32 %v2556_v33, %v2493_v8  ;;  %v3983_v42 = vpack.c.bf16 %v2493_v8, %v2492_v50  ;;  %v1657_v61 = vadd.f32 %v1591_v54, %v4503_v23  ;;  %v3962_v50 = vld [vmem:[%s4256_s8 + $0x168] sm:$0xff]  ;;  %v2543_v23 = vld [vmem:[%s4945_s3 + $0xb8] sm:$0xff]  ;;  %v2566_v31 = vpop.permute.xlu1 %2565 }
 0x1cc   : > { %2665 = vperm.xlu2 %4112, %v2543_v23  }
 0x1cd   : > { %v2369_v13 = vpop.f32.mrf.mxu0  ;;  %v2434_v38 = vadd.f32 %v2367_v9, %v2176_v51  ;;  %v2716_v47 = vadd.f32 %v2689_v55, %v2688_v25  ;;  %v2751_v62 = vmul.f32 %v2689_v55, %v2493_v8  ;;  %3984 = vst [vmem:[%s4790_s30] sm:$0xff] %v3983_v42  }
 0x1cf   : > { %v2778_v14 = vadd.f32 %v2751_v62, %v2750_v0  ;;  %v2466_v48 = vadd.f32 %v4759_v20, %v2434_v38 }
 0x1d0   : > { %v1853_v28 = vpop.f32.mrf.mxu2 }
 0x1d1   : > { %v1919_v44 = vadd.f32 %v1853_v28, %v1657_v61  ;;  %v2494_v4 = vmax.f32 %v2466_v48, 0.0 }
 0x1d2   : > { %v1594_v26 = vpop.f32.mrf.mxu1  ;;  %v4804_v9 = vpop.f32.mrf.mxu3 }
 0x1d3   : > { %v2177_v6 = vadd.f32 %v4727_v41, %v1919_v44  ;;  %v2690_v59 = vmul.f32 %v2561_v19, %v2494_v4  ;;  %v1658_v41 = vadd.f32 %v1594_v26, %v4508_v3  ;;  %v2571_v19 = vpop.permute.xlu2 %2570  ;;  %v3976_v26 = vld [vmem:[%s4256_s8 + $0x168] sm:$0xff] }
 0x1d4   : > { %2680 = vperm.xlu2 %4112, %v2546_v58  }
 0x1d5   : > { %v2372_v21 = vpop.f32.mrf.mxu0  ;;  %v2435_v27 = vadd.f32 %v2369_v13, %v2177_v6  ;;  %v2717_v35 = vadd.f32 %v2716_v47, %v2690_v59  ;;  %v2752_v5 = vmul.f32 %v2690_v59, %v2494_v4  ;;  %3537 = vmatmul.msk.bf16.gmra.mxu1 %vm425_vm1, %v3930_v30  ;;  %3642 = vmatmul.msk.bf16.gmra.mxu2 %vm425_vm1, %v3945_v53  ;;  %v3946_v30 = vld [vmem:[%s4256_s8 + $0x158] sm:$0xff] }
 0x1d7   : > { %v2779_v34 = vadd.f32 %v2778_v14, %v2752_v5  ;;  %v2467_v33 = vadd.f32 %v4759_v20, %v2435_v27  ;;  %3748 = vmatmul.msk.bf16.gmra.mxu3 %vm425_vm1, %v3962_v50  ;;  %v3963_v50 = vld [vmem:[%s4256_s8 + $0x170] sm:$0xff] }
 0x1d8   : > { %3850 = vmatmul.msk.bf16.gmra.mxu0 %vm425_vm1, %v3975_v39  ;;  %v1856_v25 = vpop.f32.mrf.mxu2 }
 0x1d9   : > { %v1920_v8 = vadd.f32 %v1856_v25, %v1658_v41  ;;  %v2495_v54 = vmax.f32 %v2467_v33, 0.0 }
 0x1da   : > { %v1596_v51 = vpop.f32.mrf.mxu1  ;;  %v4817_v55 = vpop.f32.mrf.mxu3 }
 0x1db   : > { %v2178_v42 = vadd.f32 %v4747_v7, %v1920_v8  ;;  %v2691_v13 = vmul.f32 %v2566_v31, %v2495_v54  ;;  %v3988_v0 = vpack.c.bf16 %v2495_v54, %v2494_v4  ;;  %v1659_v7 = vadd.f32 %v1596_v51, %v4517_v37  ;;  %v3931_v4 = vld [vmem:[%s4256_s8 + $0xe8] sm:$0xff]  ;;  %v2576_v41 = vpop.permute.xlu2 %2575 }
 0x1dd   : > { %v2374_v38 = vpop.f32.mrf.mxu0  ;;  %v2436_v3 = vadd.f32 %v2372_v21, %v2178_v42  ;;  %v2718_v47 = vadd.f32 %v2717_v35, %v2691_v13  ;;  %v2753_v62 = vmul.f32 %v2691_v13, %v2495_v54  ;;  %4050 = vst [vmem:[%s4790_s30 + $0x8] sm:$0xff] %v3988_v0  }
 0x1df   : > { %v2780_v14 = vadd.f32 %v2779_v34, %v2753_v62  ;;  %v2468_v61 = vadd.f32 %v4759_v20, %v2436_v3 }
 0x1e0   : > { %v1858_v48 = vpop.f32.mrf.mxu2 }
 0x1e1   : > { %v1921_v28 = vadd.f32 %v1858_v48, %v1659_v7  ;;  %v2496_v44 = vmax.f32 %v2468_v61, 0.0  ;;  %v3932_v61 = vld [vmem:[%s4256_s8 + $0xf0] sm:$0xff] }
 0x1e2   : > { %v1599_v53 = vpop.f32.mrf.mxu1  ;;  %v4829_v39 = vpop.f32.mrf.mxu3 }
 0x1e3   : > { %v2179_v6 = vadd.f32 %v4771_v2, %v1921_v28  ;;  %v2692_v59 = vmul.f32 %v2571_v19, %v2496_v44  ;;  %v1660_v23 = vadd.f32 %v1599_v53, %v4522_v52  ;;  %v2581_v19 = vpop.permute.xlu0 %2580  ;;  %v3977_v28 = vld [vmem:[%s4256_s8 + $0x170] sm:$0xff] }
 0x1e5   : > { %v2377_v21 = vpop.f32.mrf.mxu0  ;;  %v2437_v27 = vadd.f32 %v2374_v38, %v2179_v6  ;;  %v2719_v35 = vadd.f32 %v2718_v47, %v2692_v59  ;;  %v2754_v5 = vmul.f32 %v2692_v59, %v2496_v44  ;;  %3538 = vmatmul.msk.bf16.gmra.mxu1 %vm425_vm1, %v3931_v4  ;;  %3643 = vmatmul.msk.bf16.gmra.mxu2 %vm425_vm1, %v3946_v30 }
 0x1e7   : > { %v2781_v37 = vadd.f32 %v2780_v14, %v2754_v5  ;;  %v2469_v34 = vadd.f32 %v4759_v20, %v2437_v27  ;;  %3749 = vmatmul.msk.bf16.gmra.mxu3 %vm425_vm1, %v3963_v50 }
 0x1e8   : > { %3851 = vmatmul.msk.bf16.gmra.mxu0 %vm425_vm1, %v3976_v26  ;;  %v1861_v2 = vpop.f32.mrf.mxu2 }
 0x1e9   : > { %v1922_v33 = vadd.f32 %v1861_v2, %v1660_v23  ;;  %v2497_v25 = vmax.f32 %v2469_v34, 0.0 }
 0x1ea   : > { %v1601_v31 = vpop.f32.mrf.mxu1  ;;  %v4839_v8 = vpop.f32.mrf.mxu3 }
 0x1eb   : > { %v2180_v54 = vadd.f32 %v4792_v11, %v1922_v33  ;;  %v2693_v51 = vmul.f32 %v2576_v41, %v2497_v25  ;;  %v3993_v42 = vpack.c.bf16 %v2497_v25, %v2496_v44  ;;  %v1661_v47 = vadd.f32 %v1601_v31, %v4530_v15  ;;  %v3947_v11 = vld [vmem:[%s4256_s8 + $0x160] sm:$0xff] }
 0x1ed   : > { %v2379_v52 = vpop.f32.mrf.mxu0  ;;  %v2438_v13 = vadd.f32 %v2377_v21, %v2180_v54  ;;  %v2720_v0 = vadd.f32 %v2719_v35, %v2693_v51  ;;  %v2755_v38 = vmul.f32 %v2693_v51, %v2497_v25  ;;  %4051 = vst [vmem:[%s4790_s30 + $0x10] sm:$0xff] %v3993_v42   ;;  %v2586_v35 = vpop.permute.xlu1 %2585 }
 0x1ef   : > { %v2782_v3 = vadd.f32 %v2781_v37, %v2755_v38  ;;  %v2470_v62 = vadd.f32 %v4759_v20, %v2438_v13  ;;  %v2591_v13 = vpop.permute.xlu2 %2590  ;;  %v3933_v38 = vld [vmem:[%s4256_s8 + $0xf8] sm:$0xff] }
 0x1f0   : > { %v1863_v58 = vpop.f32.mrf.mxu2 }
 0x1f1   : > { %v1923_v14 = vadd.f32 %v1863_v58, %v1661_v47  ;;  %v2498_v7 = vmax.f32 %v2470_v62, 0.0  ;;  %v3978_v62 = vld [vmem:[%s4256_s8 + $0x178] sm:$0xff] }
 0x1f2   : > { %v1604_v48 = vpop.f32.mrf.mxu1  ;;  %v4848_v44 = vpop.f32.mrf.mxu3 }
 0x1f3   : > { %v2181_v4 = vadd.f32 %v4804_v9, %v1923_v14  ;;  %v2694_v30 = vmul.f32 %v2581_v19, %v2498_v7  ;;  %v1662_v21 = vadd.f32 %v1604_v48, %v4535_v49 }
 0x1f5   : > { %v2382_v53 = vpop.f32.mrf.mxu0  ;;  %v2439_v26 = vadd.f32 %v2379_v52, %v2181_v4  ;;  %v2721_v6 = vadd.f32 %v2720_v0, %v2694_v30  ;;  %v2756_v59 = vmul.f32 %v2694_v30, %v2498_v7  ;;  %3539 = vmatmul.msk.bf16.gmra.mxu1 %vm425_vm1, %v3932_v61  ;;  %3644 = vmatmul.msk.bf16.gmra.mxu2 %vm425_vm1, %v3947_v11 }
 0x1f7   : > { %v2783_v15 = vadd.f32 %v2782_v3, %v2756_v59  ;;  %v2471_v50 = vadd.f32 %v4759_v20, %v2439_v26  ;;  %v3948_v3 = vld [vmem:[%s4256_s8 + $0x168] sm:$0xff]  ;;  %s4068_s8 = smul.u32 14, %s4960_s22 }
 0x1f8   : > { %3852 = vmatmul.msk.bf16.gmra.mxu0 %vm425_vm1, %v3977_v28  ;;  %v1866_v27 = vpop.f32.mrf.mxu2 }
 0x1f9   : > { %v1924_v9 = vadd.f32 %v1866_v27, %v1662_v21  ;;  %v2499_v5 = vmax.f32 %v2471_v50, 0.0  ;;  %s302_s14 = sadd.s32 %s4068_s8, %s4962_s21 }
 0x1fa   : > { %v1606_v37 = vpop.f32.mrf.mxu1  ;;  %v4857_v33 = vpop.f32.mrf.mxu3  ;;  %s303_s17 = scalar_lea.vmem %s4947_s5, %s302_s14  ;;  %s310_s20 = scalar_lea.vmem %s4948_s6, %s302_s14 }
 0x1fb   : > { %v2182_v23 = vadd.f32 %v4817_v55, %v1924_v9  ;;  %v2695_v34 = vmul.f32 %v2586_v35, %v2499_v5  ;;  %v3998_v2 = vpack.c.bf16 %v2499_v5, %v2498_v7  ;;  %v1663_v51 = vadd.f32 %v1606_v37, %v4544_v32 }
 0x1fd   : > { %v2384_v41 = vpop.f32.mrf.mxu0  ;;  %v2440_v25 = vadd.f32 %v2382_v53, %v2182_v23  ;;  %v2722_v31 = vadd.f32 %v2721_v6, %v2695_v34  ;;  %v2757_v49 = vmul.f32 %v2695_v34, %v2499_v5  ;;  %4052 = vst [vmem:[%s4790_s30 + $0x18] sm:$0xff] %v3998_v2  }
 0x1ff   : > { %v2784_v54 = vadd.f32 %v2783_v15, %v2757_v49  ;;  %v2472_v42 = vadd.f32 %v4759_v20, %v2440_v25 }
 0x200   : > { %v1868_v52 = vpop.f32.mrf.mxu2 }
 0x201   : > { %v1925_v55 = vadd.f32 %v1868_v52, %v1663_v51  ;;  %v2500_v0 = vmax.f32 %v2472_v42, 0.0 }
 0x202   : > { %v1609_v47 = vpop.f32.mrf.mxu1  ;;  %v2136_v32 = vpop.f32.mrf.mxu3 }
 0x203   : > { %v2183_v58 = vadd.f32 %v4829_v39, %v1925_v55  ;;  %v2696_v19 = vmul.f32 %v2591_v13, %v2500_v0  ;;  %v1664_v28 = vadd.f32 %v1609_v47, %v4552_v12  ;;  %v2596_v39 = vpop.permute.xlu0 %2595  ;;  %v2601_v12 = vpop.permute.xlu1 %2600 }
 0x205   : > { %v2387_v14 = vpop.f32.mrf.mxu0  ;;  %v2441_v7 = vadd.f32 %v2384_v41, %v2183_v58  ;;  %v2723_v61 = vadd.f32 %v2722_v31, %v2696_v19  ;;  %v2758_v11 = vmul.f32 %v2696_v19, %v2500_v0  ;;  %3540 = vmatmul.msk.bf16.gmra.mxu1 %vm425_vm1, %v3933_v38  ;;  %3645 = vmatmul.msk.bf16.gmra.mxu2 %vm425_vm1, %v3948_v3  ;;  %v2606_v38 = vpop.permute.xlu2 %2605 }
 0x207   : > { %v2785_v48 = vadd.f32 %v2784_v54, %v2758_v11  ;;  %v2473_v4 = vadd.f32 %v4759_v20, %v2441_v7 }
 0x208   : > { %3853 = vmatmul.msk.bf16.gmra.mxu0 %vm425_vm1, %v3978_v62  ;;  %v1871_v30 = vpop.f32.mrf.mxu2 }
 0x209   : > { %v1926_v53 = vadd.f32 %v1871_v30, %v1664_v28  ;;  %v2501_v26 = vmax.f32 %v2473_v4, 0.0 }
 0x20a   : > { %v1611_v6 = vpop.f32.mrf.mxu1  ;;  %v2139_v2 = vpop.f32.mrf.mxu3 }
 0x20b   : > { %v2184_v59 = vadd.f32 %v4839_v8, %v1926_v53  ;;  %v2697_v15 = vmul.f32 %v2596_v39, %v2501_v26  ;;  %v4003_v21 = vpack.c.bf16 %v2501_v26, %v2500_v0  ;;  %v1665_v37 = vadd.f32 %v1611_v6, %v4561_v56  ;;  %v2611_v39 = vpop.permute.xlu0 %2610 }
 0x20d   : > { %v2389_v50 = vpop.f32.mrf.mxu0  ;;  %v2442_v27 = vadd.f32 %v2387_v14, %v2184_v59  ;;  %v2724_v35 = vadd.f32 %v2723_v61, %v2697_v15  ;;  %v2759_v9 = vmul.f32 %v2697_v15, %v2501_v26  ;;  %4053 = vst [vmem:[%s4790_s30 + $0x20] sm:$0xff] %v4003_v21  }
 0x20f   : > { %v2786_v5 = vadd.f32 %v2785_v48, %v2759_v9  ;;  %v2474_v23 = vadd.f32 %v4759_v20, %v2442_v27 }
 0x210   : > { %v1873_v34 = vpop.f32.mrf.mxu2 }
 0x211   : > { %v1927_v41 = vadd.f32 %v1873_v34, %v1665_v37  ;;  %v2502_v25 = vmax.f32 %v2474_v23, 0.0 }
 0x212   : > { %v1614_v31 = vpop.f32.mrf.mxu1  ;;  %v2141_v58 = vpop.f32.mrf.mxu3 }
 0x213   : > { %v2185_v8 = vadd.f32 %v4848_v44, %v1927_v41  ;;  %v2698_v49 = vmul.f32 %v2601_v12, %v2502_v25  ;;  %v1666_v55 = vadd.f32 %v1614_v31, %v4572_v18  ;;  %v2616_v12 = vpop.permute.xlu1 %2615 }
 0x215   : > { %v2392_v54 = vpop.f32.mrf.mxu0  ;;  %v2443_v51 = vadd.f32 %v2389_v50, %v2185_v8  ;;  %v2725_v42 = vadd.f32 %v2724_v35, %v2698_v49  ;;  %v2760_v52 = vmul.f32 %v2698_v49, %v2502_v25 }
 0x217   : > { %v2787_v13 = vadd.f32 %v2786_v5, %v2760_v52  ;;  %v2475_v56 = vadd.f32 %v4759_v20, %v2443_v51 }
 0x218   : > { %v1876_v0 = vpop.f32.mrf.mxu2 }
 0x219   : > { %v1928_v3 = vadd.f32 %v1876_v0, %v1666_v55  ;;  %v2503_v47 = vmax.f32 %v2475_v56, 0.0  ;;  %v2621_v56 = vpop.permute.xlu2 %2620 }
 0x21a   : > { %v1616_v62 = vpop.f32.mrf.mxu1  ;;  %v2144_v21 = vpop.f32.mrf.mxu3 }
 0x21b   : > { %v2186_v19 = vadd.f32 %v4857_v33, %v1928_v3  ;;  %v2699_v44 = vmul.f32 %v2606_v38, %v2503_v47  ;;  %v4008_v14 = vpack.c.bf16 %v2503_v47, %v2502_v25  ;;  %v1667_v18 = vadd.f32 %v1616_v62, %v4581_v43 }
 0x21d   : > { %v2394_v7 = vpop.f32.mrf.mxu0  ;;  %v2444_v61 = vadd.f32 %v2392_v54, %v2186_v19  ;;  %v2726_v11 = vadd.f32 %v2725_v42, %v2699_v44  ;;  %v2761_v48 = vmul.f32 %v2699_v44, %v2503_v47  ;;  %4054 = vst [vmem:[%s4790_s30 + $0x28] sm:$0xff] %v4008_v14  }
 0x21f   : > { %v2788_v28 = vadd.f32 %v2787_v13, %v2761_v48  ;;  %v2476_v4 = vadd.f32 %v4759_v20, %v2444_v61 }
 0x220   : > { %v1878_v30 = vpop.f32.mrf.mxu2 }
 0x221   : > { %v1929_v53 = vadd.f32 %v1878_v30, %v1667_v18  ;;  %v2504_v26 = vmax.f32 %v2476_v4, 0.0  ;;  %v2626_v4 = vpop.permute.xlu0 %2625 }
 0x222   : > { %v1619_v6 = vpop.f32.mrf.mxu1  ;;  %v2146_v42 = vpop.f32.mrf.mxu3 }
 0x223   : > { %v2187_v59 = vadd.f32 %v2136_v32, %v1929_v53  ;;  %v2700_v15 = vmul.f32 %v2611_v39, %v2504_v26  ;;  %v1668_v5 = vadd.f32 %v1619_v6, %v4589_v57 }
 0x225   : > { %v2397_v33 = vpop.f32.mrf.mxu0  ;;  %v2445_v50 = vadd.f32 %v2394_v7, %v2187_v59  ;;  %v2727_v27 = vadd.f32 %v2726_v11, %v2700_v15  ;;  %v2762_v35 = vmul.f32 %v2700_v15, %v2504_v26 }
 0x227   : > { %v2789_v9 = vadd.f32 %v2788_v28, %v2762_v35  ;;  %v2477_v43 = vadd.f32 %v4759_v20, %v2445_v50  ;;  %v2631_v35 = vpop.permute.xlu1 %2630 }
 0x228   : > { %v1881_v37 = vpop.f32.mrf.mxu2 }
 0x229   : > { %v1930_v23 = vadd.f32 %v1881_v37, %v1668_v5  ;;  %v2505_v34 = vmax.f32 %v2477_v43, 0.0 }
 0x22a   : > { %v1621_v41 = vpop.f32.mrf.mxu1  ;;  %v2149_v48 = vpop.f32.mrf.mxu3 }
 0x22b   : > { %v2188_v25 = vadd.f32 %v2139_v2, %v1930_v23  ;;  %v2701_v31 = vmul.f32 %v2616_v12, %v2505_v34  ;;  %v4013_v32 = vpack.c.bf16 %v2505_v34, %v2504_v26  ;;  %v1669_v13 = vadd.f32 %v1621_v41, %v4598_v24 }
 0x22d   : > { %v2399_v8 = vpop.f32.mrf.mxu0  ;;  %v2446_v49 = vadd.f32 %v2397_v33, %v2188_v25  ;;  %v2728_v54 = vadd.f32 %v2727_v27, %v2701_v31  ;;  %v2763_v51 = vmul.f32 %v2701_v31, %v2505_v34  ;;  %4055 = vst [vmem:[%s4790_s30 + $0x30] sm:$0xff] %v4013_v32  }
 0x22f   : > { %v2790_v52 = vadd.f32 %v2789_v9, %v2763_v51  ;;  %v2478_v57 = vadd.f32 %v4759_v20, %v2446_v49  ;;  %v2636_v51 = vpop.permute.xlu2 %2635 }
 0x230   : > { %v1883_v55 = vpop.f32.mrf.mxu2 }
 0x231   : > { %v1931_v0 = vadd.f32 %v1883_v55, %v1669_v13  ;;  %v2506_v38 = vmax.f32 %v2478_v57, 0.0 }
 0x232   : > { %v1624_v3 = vpop.f32.mrf.mxu1  ;;  %v2151_v37 = vpop.f32.mrf.mxu3 }
 0x233   : > { %v2189_v47 = vadd.f32 %v2141_v58, %v1931_v0  ;;  %v2702_v2 = vmul.f32 %v2621_v56, %v2506_v38  ;;  %v1670_v11 = vadd.f32 %v1624_v3, %v4606_v36 }
 0x235   : > { %v2402_v62 = vpop.f32.mrf.mxu0  ;;  %v2447_v19 = vadd.f32 %v2399_v8, %v2189_v47  ;;  %v2729_v44 = vadd.f32 %v2728_v54, %v2702_v2  ;;  %v2764_v14 = vmul.f32 %v2702_v2, %v2506_v38 }
 0x237   : > { %v2791_v7 = vadd.f32 %v2790_v52, %v2764_v14  ;;  %v2479_v61 = vadd.f32 %v4759_v20, %v2447_v19  ;;  %v2641_v14 = vpop.permute.xlu0 %2640 }
 0x238   : > { %v1886_v24 = vpop.f32.mrf.mxu2 }
 0x239   : > { %v2507_v28 = vmax.f32 %v2479_v61, 0.0  ;;  %v1932_v18 = vadd.f32 %v1886_v24, %v1670_v11 }
 0x23a   : > { %v1626_v30 = vpop.f32.mrf.mxu1 }
 0x23b   : > { %v2703_v39 = vmul.f32 %v2626_v4, %v2507_v28  ;;  %v4018_v53 = vpack.c.bf16 %v2507_v28, %v2506_v38  ;;  %v2190_v58 = vadd.f32 %v2144_v21, %v1932_v18  ;;  %v1671_v50 = vadd.f32 %v1626_v30, %v4615_v17 }
 0x23d   : > { %v2404_v26 = vpop.f32.mrf.mxu0  ;;  %v2730_v6 = vadd.f32 %v2729_v44, %v2703_v39  ;;  %v2765_v59 = vmul.f32 %v2703_v39, %v2507_v28  ;;  %4056 = vst [vmem:[%s4790_s30 + $0x38] sm:$0xff] %v4018_v53   ;;  %v2448_v15 = vadd.f32 %v2402_v62, %v2190_v58 }
 0x23f   : > { %v2792_v33 = vadd.f32 %v2791_v7, %v2765_v59  ;;  %v2480_v27 = vadd.f32 %v4759_v20, %v2448_v15 }
 0x240   : > { %v1888_v36 = vpop.f32.mrf.mxu2 }
 0x241   : > { %v2508_v9 = vmax.f32 %v2480_v27, 0.0  ;;  %v1933_v5 = vadd.f32 %v1888_v36, %v1671_v50 }
 0x242   : > { %v1629_v43 = vpop.f32.mrf.mxu1 }
 0x243   : > { %v2704_v12 = vmul.f32 %v2631_v35, %v2508_v9  ;;  %v2191_v23 = vadd.f32 %v2146_v42, %v1933_v5  ;;  %v1672_v17 = vadd.f32 %v1629_v43, %v4629_v40  ;;  %v2154_v42 = vpop.f32.mrf.mxu3 }
 0x245   : > { %v2407_v34 = vpop.f32.mrf.mxu0  ;;  %v2731_v21 = vadd.f32 %v2730_v6, %v2704_v12  ;;  %v2766_v41 = vmul.f32 %v2704_v12, %v2508_v9  ;;  %v2449_v25 = vadd.f32 %v2404_v26, %v2191_v23  ;;  %v2646_v6 = vpop.permute.xlu1 %2645 }
 0x247   : > { %v2793_v31 = vadd.f32 %v2792_v33, %v2766_v41  ;;  %v2481_v32 = vadd.f32 %v4759_v20, %v2449_v25 }
 0x248   : > { %v1891_v8 = vpop.f32.mrf.mxu2 }
 0x249   : > { %v2509_v49 = vmax.f32 %v2481_v32, 0.0  ;;  %v1934_v54 = vadd.f32 %v1891_v8, %v1672_v17 }
 0x24a   : > { %v1631_v52 = vpop.f32.mrf.mxu1 }
 0x24b   : > { %v2705_v13 = vmul.f32 %v2636_v51, %v2509_v49  ;;  %v4023_v57 = vpack.c.bf16 %v2509_v49, %v2508_v9  ;;  %v2192_v55 = vadd.f32 %v2149_v48, %v1934_v54  ;;  %v1673_v62 = vadd.f32 %v1631_v52, %v4638_v16  ;;  %v2156_v4 = vpop.f32.mrf.mxu3 }
 0x24d   : > { %v2409_v56 = vpop.f32.mrf.mxu0  ;;  %v2732_v0 = vadd.f32 %v2731_v21, %v2705_v13  ;;  %v2767_v38 = vmul.f32 %v2705_v13, %v2509_v49  ;;  %4057 = vst [vmem:[%s4790_s30 + $0x40] sm:$0xff] %v4023_v57   ;;  %v2450_v3 = vadd.f32 %v2407_v34, %v2192_v55  ;;  %v2651_v21 = vpop.permute.xlu2 %2650 }
 0x24f   : > { %v2794_v47 = vadd.f32 %v2793_v31, %v2767_v38  ;;  %v2482_v2 = vadd.f32 %v4759_v20, %v2450_v3 }
 0x250   : > { %v1893_v40 = vpop.f32.mrf.mxu2 }
 0x251   : > { %v2510_v19 = vmax.f32 %v2482_v2, 0.0  ;;  %v1935_v44 = vadd.f32 %v1893_v40, %v1673_v62 }
 0x252   : > { %v1634_v7 = vpop.f32.mrf.mxu1 }
 0x253   : > { %v2706_v61 = vmul.f32 %v2641_v14, %v2510_v19  ;;  %v2193_v11 = vadd.f32 %v2151_v37, %v1935_v44  ;;  %v1674_v53 = vadd.f32 %v1634_v7, %v4649_v63  ;;  %v2159_v63 = vpop.f32.mrf.mxu3 }
 0x255   : > { %v2412_v24 = vpop.f32.mrf.mxu0  ;;  %v2733_v48 = vadd.f32 %v2732_v0, %v2706_v61  ;;  %v2768_v28 = vmul.f32 %v2706_v61, %v2510_v19  ;;  %v2451_v18 = vadd.f32 %v2409_v56, %v2193_v11  ;;  %v2661_v11 = vpop.permute.xlu1 %2660 }
 0x257   : > { %v2795_v30 = vadd.f32 %v2794_v47, %v2768_v28  ;;  %v2483_v39 = vadd.f32 %v4759_v20, %v2451_v18 }
 0x258   : > { %v1896_v58 = vpop.f32.mrf.mxu2 }
 0x259   : > { %v2511_v16 = vmax.f32 %v2483_v39, 0.0  ;;  %v1936_v26 = vadd.f32 %v1896_v58, %v1674_v53 }
 0x25a   : > { %v1636_v59 = vpop.f32.mrf.mxu1 }
 0x25b   : > { %v2707_v15 = vmul.f32 %v2646_v6, %v2511_v16  ;;  %v4028_v33 = vpack.c.bf16 %v2511_v16, %v2510_v19  ;;  %v2194_v50 = vadd.f32 %v2154_v42, %v1936_v26  ;;  %v1675_v37 = vadd.f32 %v1636_v59, %v4658_v46  ;;  %v2656_v46 = vpop.permute.xlu0 %2655  ;;  %v2161_v42 = vpop.f32.mrf.mxu3 }
 0x25d   : > { %v2414_v27 = vpop.f32.mrf.mxu0  ;;  %v2734_v36 = vadd.f32 %v2733_v48, %v2707_v15  ;;  %v2769_v35 = vmul.f32 %v2707_v15, %v2511_v16  ;;  %4058 = vst [vmem:[%s4790_s30 + $0x48] sm:$0xff] %v4028_v33   ;;  %v2452_v9 = vadd.f32 %v2412_v24, %v2194_v50  ;;  %v2666_v15 = vpop.permute.xlu2 %2665 }
 0x25f   : > { %v2796_v5 = vadd.f32 %v2795_v30, %v2769_v35  ;;  %v2484_v43 = vadd.f32 %v4759_v20, %v2452_v9 }
 0x260   : > { %v1898_v12 = vpop.f32.mrf.mxu2 }
 0x261   : > { %v2512_v23 = vmax.f32 %v2484_v43, 0.0  ;;  %v1937_v34 = vadd.f32 %v1898_v12, %v1675_v37 }
 0x262   : > { %v1639_v41 = vpop.f32.mrf.mxu1 }
 0x263   : > { %v2708_v25 = vmul.f32 %v2651_v21, %v2512_v23  ;;  %v2195_v31 = vadd.f32 %v2156_v4, %v1937_v34  ;;  %v1676_v52 = vadd.f32 %v1639_v41, %v4669_v45  ;;  %v2164_v18 = vpop.f32.mrf.mxu3  ;;  %v2671_v41 = vpop.permute.xlu0 %2670 }
 0x265   : > { %v2417_v32 = vpop.f32.mrf.mxu0  ;;  %v2735_v17 = vadd.f32 %v2734_v36, %v2708_v25  ;;  %v2770_v8 = vmul.f32 %v2708_v25, %v2512_v23  ;;  %v2453_v49 = vadd.f32 %v2414_v27, %v2195_v31 }
 0x267   : > { %v2797_v54 = vadd.f32 %v2796_v5, %v2770_v8  ;;  %v2485_v51 = vadd.f32 %v4759_v20, %v2453_v49 }
 0x268   : > { %v1901_v13 = vpop.f32.mrf.mxu2 }
 0x269   : > { %v2513_v57 = vmax.f32 %v2485_v51, 0.0  ;;  %v1938_v55 = vadd.f32 %v1901_v13, %v1676_v52 }
 0x26a   : > { %v1641_v56 = vpop.f32.mrf.mxu1 }
 0x26b   : > { %v2709_v0 = vmul.f32 %v2656_v46, %v2513_v57  ;;  %v4033_v38 = vpack.c.bf16 %v2513_v57, %v2512_v23  ;;  %v2196_v3 = vadd.f32 %v2159_v63, %v1938_v55  ;;  %v1677_v14 = vadd.f32 %v1641_v56, %v4678_v60  ;;  %v2166_v43 = vpop.f32.mrf.mxu3  ;;  %v2676_v55 = vpop.permute.xlu1 %2675 }
 0x26d   : > { %v2419_v47 = vpop.f32.mrf.mxu0  ;;  %v2736_v2 = vadd.f32 %v2735_v17, %v2709_v0  ;;  %v2771_v62 = vmul.f32 %v2709_v0, %v2513_v57  ;;  %4059 = vst [vmem:[%s4790_s30 + $0x50] sm:$0xff] %v4033_v38   ;;  %v2454_v40 = vadd.f32 %v2417_v32, %v2196_v3 }
 0x26f   : > { %v2798_v19 = vadd.f32 %v2797_v54, %v2771_v62  ;;  %v2486_v44 = vadd.f32 %v4759_v20, %v2454_v40 }
 0x270   : > { %v1903_v45 = vpop.f32.mrf.mxu2 }
 0x271   : > { %v2514_v7 = vmax.f32 %v2486_v44, 0.0  ;;  %v1939_v61 = vadd.f32 %v1903_v45, %v1677_v14 }
 0x272   : > { %v1644_v24 = vpop.f32.mrf.mxu1 }
 0x273   : > { %v2710_v48 = vmul.f32 %v2661_v11, %v2514_v7  ;;  %v2197_v28 = vadd.f32 %v2161_v42, %v1939_v61  ;;  %v1678_v26 = vadd.f32 %v1644_v24, %v4694_v29  ;;  %v2169_v13 = vpop.f32.mrf.mxu3 }
 0x275   : > { %v2737_v4 = vadd.f32 %v2736_v2, %v2710_v48  ;;  %v2772_v30 = vmul.f32 %v2710_v48, %v2514_v7  ;;  %v2455_v39 = vadd.f32 %v2419_v47, %v2197_v28  ;;  %v2422_v53 = vpop.f32.mrf.mxu0 }
 0x277   : > { %v2799_v58 = vadd.f32 %v2798_v19, %v2772_v30  ;;  %v2487_v16 = vadd.f32 %v4759_v20, %v2455_v39 }
 0x278   : > { %v1906_v6 = vpop.f32.mrf.mxu2 }
 0x279   : > { %v2515_v60 = vmax.f32 %v2487_v16, 0.0  ;;  %v1940_v59 = vadd.f32 %v1906_v6, %v1678_v26 }
 0x27a   : > { %v1646_v33 = vpop.f32.mrf.mxu1 }
 0x27b   : > { %v2711_v50 = vmul.f32 %v2666_v15, %v2515_v60  ;;  %v4038_v27 = vpack.c.bf16 %v2515_v60, %v2514_v7  ;;  %v2198_v36 = vadd.f32 %v2164_v18, %v1940_v59  ;;  %v1679_v63 = vadd.f32 %v1646_v33, %v4705_v1  ;;  %v2681_v7 = vpop.permute.xlu2 %2680  ;;  %v2171_v61 = vpop.f32.mrf.mxu3 }
 0x27d   : > { %v2738_v35 = vadd.f32 %v2737_v4, %v2711_v50  ;;  %v2773_v9 = vmul.f32 %v2711_v50, %v2515_v60  ;;  %4060 = vst [vmem:[%s4790_s30 + $0x58] sm:$0xff] %v4038_v27   ;;  %v2456_v5 = vadd.f32 %v2422_v53, %v2198_v36  ;;  %v2424_v23 = vpop.f32.mrf.mxu0 }
 0x27f   : > { %v2800_v37 = vadd.f32 %v2799_v58, %v2773_v9  ;;  %v2488_v12 = vadd.f32 %v4759_v20, %v2456_v5  ;;  %v2686_v58 = vpop.permute.xlu0 %2685 }
 0x280   : > { %v1908_v29 = vpop.f32.mrf.mxu2 }
 0x281   : > { %v2516_v34 = vmax.f32 %v2488_v12, 0.0  ;;  %v1941_v21 = vadd.f32 %v1908_v29, %v1679_v63 }
 0x282   : > { %v1649_v25 = vpop.f32.mrf.mxu1 }
 0x283   : > { %v2712_v31 = vmul.f32 %v2671_v41, %v2516_v34  ;;  %v2199_v32 = vadd.f32 %v2166_v43, %v1941_v21  ;;  %v1680_v52 = vadd.f32 %v1649_v25, %v4718_v22 }
 0x285   : > { %v2739_v17 = vadd.f32 %v2738_v35, %v2712_v31  ;;  %v2774_v8 = vmul.f32 %v2712_v31, %v2516_v34  ;;  %v2457_v49 = vadd.f32 %v2424_v23, %v2199_v32  ;;  %v2427_v56 = vpop.f32.mrf.mxu0 }
 0x287   : > { %v2801_v54 = vadd.f32 %v2800_v37, %v2774_v8  ;;  %v2489_v51 = vadd.f32 %v4759_v20, %v2457_v49 }
 0x288   : > { %v1911_v46 = vpop.f32.mrf.mxu2 }
 0x289   : > { %v2517_v1 = vmax.f32 %v2489_v51, 0.0  ;;  %v1942_v57 = vadd.f32 %v1911_v46, %v1680_v52 }
 0x28a   : > { %v1651_v3 = vpop.f32.mrf.mxu1 }
 0x28b   : > { %v2713_v42 = vmul.f32 %v2676_v55, %v2517_v1  ;;  %v4043_v0 = vpack.c.bf16 %v2517_v1, %v2516_v34  ;;  %v2200_v38 = vadd.f32 %v2169_v13, %v1942_v57  ;;  %v1681_v44 = vadd.f32 %v1651_v3, %v4735_v10 }
 0x28d   : > { %v2740_v47 = vadd.f32 %v2739_v17, %v2713_v42  ;;  %v2775_v2 = vmul.f32 %v2713_v42, %v2517_v1  ;;  %4061 = vst [vmem:[%s4790_s30 + $0x60] sm:$0xff] %v4043_v0   ;;  %v2458_v62 = vadd.f32 %v2427_v56, %v2200_v38  ;;  %v2429_v48 = vpop.f32.mrf.mxu0 }
 0x28f   : > { %v2802_v40 = vadd.f32 %v2801_v54, %v2775_v2  ;;  %v2490_v19 = vadd.f32 %v4759_v20, %v2458_v62 }
 0x290   : > { %v1913_v22 = vpop.f32.mrf.mxu2 }
 0x291   : > { %v2518_v14 = vmax.f32 %v2490_v19, 0.0  ;;  %v1943_v45 = vadd.f32 %v1913_v22, %v1681_v44 }
 0x293   : > { %v2714_v11 = vmul.f32 %v2681_v7, %v2518_v14  ;;  %v2201_v24 = vadd.f32 %v2171_v61, %v1943_v45 }
 0x295   : > { %v2741_v28 = vadd.f32 %v2740_v47, %v2714_v11  ;;  %v2776_v18 = vmul.f32 %v2714_v11, %v2518_v14  ;;  %v2459_v4 = vadd.f32 %v2429_v48, %v2201_v24 }
 0x297   : > { %v2803_v30 = vadd.f32 %v2802_v40, %v2776_v18  ;;  %v2491_v39 = vadd.f32 %v4759_v20, %v2459_v4 }
 0x299   : > { %v2519_v53 = vmax.f32 %v2491_v39, 0.0 }
 0x29b   : > { %v2715_v10 = vmul.f32 %v2686_v58, %v2519_v53  ;;  %v4048_v16 = vpack.c.bf16 %v2519_v53, %v2518_v14 }
 0x29d   : > { %v2742_v26 = vadd.f32 %v2741_v28, %v2715_v10  ;;  %v2777_v6 = vmul.f32 %v2715_v10, %v2519_v53  ;;  %4062 = vst [vmem:[%s4790_s30 + $0x68] sm:$0xff] %v4048_v16  }
 0x29f   : > { %v2743_v60 = vrot.slane %v2742_v26, 4  ;;  %v2804_v59 = vadd.f32 %v2803_v30, %v2777_v6 }
 0x2a1   : > { %v2744_v15 = vadd.f32 %v2743_v60, %v2742_v26  ;;  %v2805_v33 = vrot.slane %v2804_v59, 4 }
 0x2a3   : > { %v2745_v50 = vrot.slane %v2744_v15, 2  ;;  %v2806_v27 = vadd.f32 %v2805_v33, %v2804_v59 }
 0x2a5   : > { %v2746_v36 = vadd.f32 %v2745_v50, %v2744_v15  ;;  %v2807_v35 = vrot.slane %v2806_v27, 2 }
 0x2a7   : > { %v2747_v9 = vrot.slane %v2746_v36, 1  ;;  %v2808_v5 = vadd.f32 %v2807_v35, %v2806_v27 }
 0x2a9   : > { %v2748_v20 = vadd.f32 %v2747_v9, %v2746_v36  ;;  %v2809_v43 = vrot.slane %v2808_v5, 1 }
 0x2ab   : > { %2749 = vst [vmem:[%s303_s17] sm:$0x1] %v2748_v20  ;;  %v2810_v37 = vadd.f32 %v2809_v43, %v2808_v5 }
 0x2ad   : > { %2811 = vst [vmem:[%s310_s20] sm:$0x1] %v2810_v37 }
 0x2ae PF: > { %s17_s25 = sadd.s32 1, %s4152_s25   ;;  %s4949_s21 = smov %s4144_s23 }
 0x2af   : > { %p14_p7 = scmp.ge.s32.totalorder %s17_s25, 30   ;;  %s4950_s22 = smov %s4148_s24 }
 0x2b0   : > { %s4951_s23 = smov %s4954_s26  ;;  %s4952_s24 = smov %s4958_s27 }
 0x2b1   :  { %16 = sbr.rel (!%p14_p7) target bundleno = 3 (0x3), region = 101 }

</bundles_post_ra>
